<compile_context>
chip_gen: v5e
topology: v5e:2x2
jax: 0.10.0
libtpu: 0.0.40
codegen_flags: <defaults>
</compile_context>

<pallas_src>
import functools
import math

import jax
import jax.numpy as jnp
from jax.experimental import pallas as pl
from jax.experimental.pallas import tpu as pltpu


# ----------------------------- tiling helpers -----------------------------

def _pick_block(dim, target, align):
    """Largest block <= target that is a multiple of `align` and divides `dim`;
    falls back to the full dimension (always legal for a BlockSpec)."""
    t = (min(target, dim) // align) * align
    while t >= align:
        if dim % t == 0:
            return t
        t -= align
    return dim


# ----------------------------- fused linear kernel -----------------------------

def _fused_linear_kernel(x_ref, w_ref, b_ref, *rest, act, has_ln, has_res):
    # ref order: x, w, b, [ln_gamma, ln_beta], [residual], out, acc_scratch
    if has_ln:
        g_ref, beta_ref, *rest = rest
    if has_res:
        res_ref, *rest = rest
    o_ref, acc_ref = rest

    k = pl.program_id(2)

    @pl.when(k == 0)
    def _init():
        acc_ref[...] = jnp.zeros_like(acc_ref)

    x = x_ref[...]
    if has_ln:
        # LayerNorm prologue (requires full K in this block; enforced by wrapper).
        xf = x.astype(jnp.float32)
        mean = jnp.mean(xf, axis=-1, keepdims=True)
        var = jnp.mean(jnp.square(xf - mean), axis=-1, keepdims=True)
        xf = (xf - mean) * jax.lax.rsqrt(var + 1e-5)
        xf = xf * g_ref[...].astype(jnp.float32) + beta_ref[...].astype(jnp.float32)
        x = xf.astype(w_ref.dtype)

    acc_ref[...] += jnp.dot(x, w_ref[...], preferred_element_type=jnp.float32)

    @pl.when(k == pl.num_programs(2) - 1)
    def _finalize():
        y = acc_ref[...] + b_ref[...].astype(jnp.float32)
        if act == "gelu":
            # exact (erf) GELU, matching torch.nn.GELU()
            y = 0.5 * y * (1.0 + jax.lax.erf(y * (1.0 / math.sqrt(2.0))))
        if has_res:
            y = y + res_ref[...].astype(jnp.float32)
        o_ref[...] = y.astype(o_ref.dtype)


def fused_linear(x, w, b, *, act="none", ln=None, residual=None,
                 out_dtype=jnp.bfloat16, tm=256, tn=256, tk=512):
    """y = [LN(x)] @ w + b, optional fused GELU and residual add.

    x: (M, K) bf16, w: (K, N) bf16, b: (N,) f32, ln = (gamma, beta) f32,
    residual: (M, N). Tiled (M, N, K) matmul with f32 VMEM accumulator.
    """
    M, K = x.shape
    N = w.shape[1]
    has_ln = ln is not None
    has_res = residual is not None

    bm = _pick_block(M, tm, 8)
    bn = _pick_block(N, tn, 128)
    bk = K if has_ln else _pick_block(K, tk, 128)   # LN prologue needs the full row
    grid = (M // bm, N // bn, K // bk)

    in_specs = [
        pl.BlockSpec((bm, bk), lambda i, j, k: (i, k)),
        pl.BlockSpec((bk, bn), lambda i, j, k: (k, j)),
        pl.BlockSpec((1, bn), lambda i, j, k: (0, j)),
    ]
    args = [x, w, b.reshape(1, N)]
    if has_ln:
        gamma, beta = ln
        ln_spec = pl.BlockSpec((1, K), lambda i, j, k: (0, 0))
        in_specs += [ln_spec, ln_spec]
        args += [gamma.reshape(1, K), beta.reshape(1, K)]
    if has_res:
        in_specs.append(pl.BlockSpec((bm, bn), lambda i, j, k: (i, j)))
        args.append(residual)

    return pl.pallas_call(
        functools.partial(_fused_linear_kernel, act=act,
                          has_ln=has_ln, has_res=has_res),
        out_shape=jax.ShapeDtypeStruct((M, N), out_dtype),
        grid=grid,
        in_specs=in_specs,
        out_specs=pl.BlockSpec((bm, bn), lambda i, j, k: (i, j)),
        scratch_shapes=[pltpu.VMEM((bm, bn), jnp.float32)],
        compiler_params=pltpu.CompilerParams(
            dimension_semantics=("parallel", "parallel", "arbitrary")),
    )(*args)


# ----------------------------- fused attention kernel -----------------------------

def _attn_kernel(qkv_ref, o_ref, *, num_heads, scale):
    # qkv_ref block: (1, N, 3E) bf16; o_ref block: (1, N, E)
    N = qkv_ref.shape[1]
    E = o_ref.shape[2]
    Dh = E // num_heads
    qkv = qkv_ref[0]                                   # (N, 3E) bf16

    outs = []
    for h in range(num_heads):                         # static unroll over heads
        q_h = qkv[:, h * Dh:(h + 1) * Dh]              # (N, Dh) bf16
        k_h = qkv[:, E + h * Dh: E + (h + 1) * Dh]
        v_h = qkv[:, 2 * E + h * Dh: 2 * E + (h + 1) * Dh]
        # scores = q @ k^T on the MXU (bf16 in, f32 accumulate)
        s = jax.lax.dot_general(q_h, k_h, (((1,), (1,)), ((), ())),
                                preferred_element_type=jnp.float32) * scale
        s = s - jnp.max(s, axis=-1, keepdims=True)
        p = jnp.exp(s)
        p = p * pl.reciprocal(jnp.sum(p, axis=-1, keepdims=True), approx=True)
        outs.append(jnp.dot(p.astype(v_h.dtype), v_h,
                            preferred_element_type=jnp.float32))
    # single lane-dense (N, E) store (heads concatenated along the lane axis)
    o_ref[0] = jnp.concatenate(outs, axis=-1).astype(o_ref.dtype)


def fused_attention(qkv, *, num_heads, scale):
    """qkv: (B, N, 3E) bf16 -> (B, N, E) bf16; one batch (all heads) per grid step."""
    B, N, E3 = qkv.shape
    E = E3 // 3
    return pl.pallas_call(
        functools.partial(_attn_kernel, num_heads=num_heads, scale=scale),
        out_shape=jax.ShapeDtypeStruct((B, N, E), jnp.bfloat16),
        grid=(B,),
        in_specs=[pl.BlockSpec((1, N, E3), lambda b: (b, 0, 0))],
        out_specs=pl.BlockSpec((1, N, E), lambda b: (b, 0, 0)),
        compiler_params=pltpu.CompilerParams(dimension_semantics=("parallel",)),
    )(qkv)


# ----------------------------- parameter init -----------------------------

def trunc_normal(key, shape, std=0.02):
    return std * jax.random.truncated_normal(key, -2.0, 2.0, shape, jnp.float32)


def init_params(key, *, img_size, patch_size, in_chans, embed_dim, depth,
                num_heads, mlp_ratio, num_classes):
    num_patches = (img_size // patch_size) ** 2
    hidden = int(embed_dim * mlp_ratio)
    keys = iter(jax.random.split(key, 8 + depth * 6))
    bf16 = jnp.bfloat16

    params = {
        # patch embedding conv weight, stored already flattened: (C*P*P, E)
        # (synthetic init; PyTorch conv default init not reproduced exactly)
        "patch_w": trunc_normal(next(keys), (in_chans * patch_size * patch_size,
                                             embed_dim)).astype(bf16),
        "patch_b": jnp.zeros((embed_dim,), jnp.float32),
        "cls_token": trunc_normal(next(keys), (1, 1, embed_dim)).astype(bf16),
        "pos_embed": trunc_normal(next(keys), (1, num_patches + 1, embed_dim)).astype(bf16),
        "ln_g": jnp.ones((embed_dim,), jnp.float32),
        "ln_b": jnp.zeros((embed_dim,), jnp.float32),
        "head_w": trunc_normal(next(keys), (embed_dim, num_classes)).astype(bf16),
        "head_b": jnp.zeros((num_classes,), jnp.float32),
        "blocks": [],
    }
    for _ in range(depth):
        blk = {
            "ln1_g": jnp.ones((embed_dim,), jnp.float32),
            "ln1_b": jnp.zeros((embed_dim,), jnp.float32),
            "qkv_w": trunc_normal(next(keys), (embed_dim, 3 * embed_dim)).astype(bf16),
            "qkv_b": jnp.zeros((3 * embed_dim,), jnp.float32),
            "proj_w": trunc_normal(next(keys), (embed_dim, embed_dim)).astype(bf16),
            "proj_b": jnp.zeros((embed_dim,), jnp.float32),
            "ln2_g": jnp.ones((embed_dim,), jnp.float32),
            "ln2_b": jnp.zeros((embed_dim,), jnp.float32),
            "fc1_w": trunc_normal(next(keys), (embed_dim, hidden)).astype(bf16),
            "fc1_b": jnp.zeros((hidden,), jnp.float32),
            "fc2_w": trunc_normal(next(keys), (hidden, embed_dim)).astype(bf16),
            "fc2_b": jnp.zeros((embed_dim,), jnp.float32),
        }
        params["blocks"].append(blk)
    return params


# ----------------------------- forward pass -----------------------------

def vit_forward(x, params, *, patch_size, num_heads):
    B, C, H, W = x.shape
    P = patch_size
    gh, gw = H // P, W // P
    E = params["patch_w"].shape[1]
    Dh = E // num_heads
    scale = Dh ** -0.5
    bf16 = jnp.bfloat16

    # --- PatchEmbed: stride-P conv == patch extraction + matmul ---
    # (B,C,H,W) -> (B, gh, gw, C, P, P) -> (B*gh*gw, C*P*P), flatten order (c,i,j)
    patches = x.reshape(B, C, gh, P, gw, P).transpose(0, 2, 4, 1, 3, 5)
    patches = patches.reshape(B * gh * gw, C * P * P).astype(bf16)
    tok = fused_linear(patches, params["patch_w"], params["patch_b"])     # (B*gp, E) bf16
    tok = tok.reshape(B, gh * gw, E)

    # --- cls token + positional embedding (dropout is identity, p=0) ---
    cls = jnp.broadcast_to(params["cls_token"], (B, 1, E))
    h = jnp.concatenate([cls, tok], axis=1) + params["pos_embed"]
    N = h.shape[1]
    h2 = h.reshape(B * N, E)                                              # bf16 residual stream

    # --- transformer blocks ---
    for blk in params["blocks"]:
        # attention branch: LN1 fused into QKV; head split inside attention kernel;
        # residual add fused into proj epilogue (no standalone LN / add / transpose).
        qkv = fused_linear(h2, blk["qkv_w"], blk["qkv_b"],
                           ln=(blk["ln1_g"], blk["ln1_b"]))               # (B*N, 3E) bf16
        attn = fused_attention(qkv.reshape(B, N, 3 * E),
                               num_heads=num_heads, scale=scale)          # (B, N, E) bf16
        h2 = fused_linear(attn.reshape(B * N, E), blk["proj_w"], blk["proj_b"],
                          residual=h2)

        # MLP branch: LN2+FC1+GELU fused, residual fused into FC2 epilogue.
        y = fused_linear(h2, blk["fc1_w"], blk["fc1_b"], act="gelu",
                         ln=(blk["ln2_g"], blk["ln2_b"]))
        h2 = fused_linear(y, blk["fc2_w"], blk["fc2_b"], residual=h2)

    # --- final norm + classification head, fused, on cls tokens only ---
    # (LayerNorm is per-row, so restricting it to the cls rows is exact.)
    cls_rows = h2.reshape(B, N, E)[:, 0, :]                               # (B, E) bf16
    logits = fused_linear(cls_rows, params["head_w"], params["head_b"],
                          ln=(params["ln_g"], params["ln_b"]),
                          out_dtype=jnp.float32)                          # (B, num_classes)
    return logits


# ----------------------------- main -----------------------------

if __name__ == "__main__":
    # small, ViT-consistent shapes
    IMG, PATCH, CIN = 16, 4, 3
    EMBED, DEPTH, HEADS = 32, 2, 4
    MLP_RATIO, NUM_CLASSES = 4.0, 10
    B = 2

    key = jax.random.PRNGKey(0)
    kx, kp = jax.random.split(key)
    x = jax.random.normal(kx, (B, CIN, IMG, IMG), jnp.float32)   # NCHW, like PyTorch
    params = init_params(kp, img_size=IMG, patch_size=PATCH, in_chans=CIN,
                         embed_dim=EMBED, depth=DEPTH, num_heads=HEADS,
                         mlp_ratio=MLP_RATIO, num_classes=NUM_CLASSES)

    fwd = jax.jit(functools.partial(vit_forward, patch_size=PATCH, num_heads=HEADS))
    logits = fwd(x, params)
    logits = jax.block_until_ready(logits)
    assert logits.shape == (B, NUM_CLASSES)
    assert bool(jnp.all(jnp.isfinite(logits)))
    print("KERNEL_OK")
</pallas_src>

<mosaic_0001>
module attributes {stable_mosaic.version = 11 : i64} {
  func.func @_fused_linear_kernel(%arg0: i32, %arg1: i32, %arg2: i32, %arg3: memref<34x32xbf16, #tpu.memory_space<vmem>>, %arg4: memref<32x96xbf16, #tpu.memory_space<vmem>>, %arg5: memref<1x96xf32, #tpu.memory_space<vmem>>, %arg6: memref<1x32xf32, #tpu.memory_space<vmem>>, %arg7: memref<1x32xf32, #tpu.memory_space<vmem>>, %arg8: memref<34x96xbf16, #tpu.memory_space<vmem>>, %arg9: memref<34x96xf32, #tpu.memory_space<vmem>>) attributes {dimension_semantics = [#tpu.dimension_semantics<parallel>, #tpu.dimension_semantics<parallel>, #tpu.dimension_semantics<arbitrary>], iteration_bounds = array<i64: 1, 1, 1>, scalar_prefetch = 0 : i64, scratch_operands = 1 : i64, tpu.core_type = #tpu.core_type<tc>, window_params = [{transform_indices = @transform_0, window_bounds = array<i64: 34, 32>}, {transform_indices = @transform_1, window_bounds = array<i64: 32, 96>}, {transform_indices = @transform_2, window_bounds = array<i64: 1, 96>}, {pipeline_mode = #tpu.pipeline_mode<synchronous>, transform_indices = @transform_3, window_bounds = array<i64: 1, 32>}, {pipeline_mode = #tpu.pipeline_mode<synchronous>, transform_indices = @transform_4, window_bounds = array<i64: 1, 32>}, {transform_indices = @transform_5, window_bounds = array<i64: 34, 96>}]} {
    %c0_i32 = arith.constant 0 : i32
    %0 = arith.cmpi eq, %arg2, %c0_i32 : i32
    %1 = arith.extui %0 : i1 to i32
    %c0_i32_0 = arith.constant 0 : i32
    %2 = arith.cmpi ne, %1, %c0_i32_0 : i32
    scf.if %2 {
      %cst_19 = arith.constant 0.000000e+00 : f32
      %38 = vector.broadcast %cst_19 : f32 to vector<34x96xf32>
      %c0_20 = arith.constant 0 : index
      %c0_21 = arith.constant 0 : index
      %39 = vector.load %arg9[%c0_20, %c0_21] : memref<34x96xf32, #tpu.memory_space<vmem>>, vector<34x96xf32>
      tpu.vector_store %arg9[%c0_20, %c0_21], %38 {strides = array<i32>} : memref<34x96xf32, #tpu.memory_space<vmem>>, vector<34x96xf32>,
    } else {
    }
    %c0 = arith.constant 0 : index
    %c0_1 = arith.constant 0 : index
    %3 = vector.load %arg3[%c0, %c0_1] : memref<34x32xbf16, #tpu.memory_space<vmem>>, vector<34x32xbf16>
    %4 = arith.extf %3 : vector<34x32xbf16> to vector<34x32xf32>
    %cst = arith.constant dense<0.000000e+00> : vector<34xf32>
    %5 = vector.multi_reduction <add>, %4, %cst [1] : vector<34x32xf32> to vector<34xf32>
    %6 = vector.shape_cast %5 : vector<34xf32> to vector<34x1xf32>
    %cst_2 = arith.constant 3.200000e+01 : f32
    %7 = vector.broadcast %cst_2 : f32 to vector<34x1xf32>
    %8 = arith.divf %6, %7 : vector<34x1xf32>
    %9 = vector.broadcast %8 : vector<34x1xf32> to vector<34x32xf32>
    %10 = arith.subf %4, %9 : vector<34x32xf32>
    %11 = arith.mulf %10, %10 : vector<34x32xf32>
    %cst_3 = arith.constant dense<0.000000e+00> : vector<34xf32>
    %12 = vector.multi_reduction <add>, %11, %cst_3 [1] : vector<34x32xf32> to vector<34xf32>
    %13 = vector.shape_cast %12 : vector<34xf32> to vector<34x1xf32>
    %cst_4 = arith.constant 3.200000e+01 : f32
    %14 = vector.broadcast %cst_4 : f32 to vector<34x1xf32>
    %15 = arith.divf %13, %14 : vector<34x1xf32>
    %16 = vector.broadcast %8 : vector<34x1xf32> to vector<34x32xf32>
    %17 = arith.subf %4, %16 : vector<34x32xf32>
    %cst_5 = arith.constant 9.99999974E-6 : f32
    %18 = vector.broadcast %cst_5 : f32 to vector<34x1xf32>
    %19 = arith.addf %15, %18 : vector<34x1xf32>
    %20 = math.rsqrt %19 : vector<34x1xf32>
    %21 = vector.broadcast %20 : vector<34x1xf32> to vector<34x32xf32>
    %22 = arith.mulf %17, %21 : vector<34x32xf32>
    %c0_6 = arith.constant 0 : index
    %c0_7 = arith.constant 0 : index
    %23 = vector.load %arg6[%c0_6, %c0_7] : memref<1x32xf32, #tpu.memory_space<vmem>>, vector<1x32xf32>
    %24 = vector.broadcast %23 : vector<1x32xf32> to vector<34x32xf32>
    %25 = arith.mulf %22, %24 : vector<34x32xf32>
    %c0_8 = arith.constant 0 : index
    %c0_9 = arith.constant 0 : index
    %26 = vector.load %arg7[%c0_8, %c0_9] : memref<1x32xf32, #tpu.memory_space<vmem>>, vector<1x32xf32>
    %27 = vector.broadcast %26 : vector<1x32xf32> to vector<34x32xf32>
    %28 = arith.addf %25, %27 : vector<34x32xf32>
    %29 = arith.truncf %28 : vector<34x32xf32> to vector<34x32xbf16>
    %c0_10 = arith.constant 0 : index
    %c0_11 = arith.constant 0 : index
    %30 = vector.load %arg9[%c0_10, %c0_11] : memref<34x96xf32, #tpu.memory_space<vmem>>, vector<34x96xf32>
    %c0_12 = arith.constant 0 : index
    %c0_13 = arith.constant 0 : index
    %31 = vector.load %arg4[%c0_12, %c0_13] : memref<32x96xbf16, #tpu.memory_space<vmem>>, vector<32x96xbf16>
    %cst_14 = arith.constant dense<0.000000e+00> : vector<34x96xf32>
    %32 = tpu.matmul %29, %31, %cst_14 {dimension_numbers = #tpu.dot_dimension_numbers<[1], [0], [0], [1], [0, 0, 1, 1], [], []>} : vector<34x32xbf16>, vector<32x96xbf16>, vector<34x96xf32> -> vector<34x96xf32>
    %33 = arith.addf %30, %32 : vector<34x96xf32>
    %c0_15 = arith.constant 0 : index
    %c0_16 = arith.constant 0 : index
    %34 = vector.load %arg9[%c0_15, %c0_16] : memref<34x96xf32, #tpu.memory_space<vmem>>, vector<34x96xf32>
    tpu.vector_store %arg9[%c0_15, %c0_16], %33 {strides = array<i32>} : memref<34x96xf32, #tpu.memory_space<vmem>>, vector<34x96xf32>,
    %c0_i32_17 = arith.constant 0 : i32
    %35 = arith.cmpi eq, %arg2, %c0_i32_17 : i32
    %36 = arith.extui %35 : i1 to i32
    %c0_i32_18 = arith.constant 0 : i32
    %37 = arith.cmpi ne, %36, %c0_i32_18 : i32
    scf.if %37 {
      %c0_19 = arith.constant 0 : index
      %c0_20 = arith.constant 0 : index
      %38 = vector.load %arg9[%c0_19, %c0_20] : memref<34x96xf32, #tpu.memory_space<vmem>>, vector<34x96xf32>
      %c0_21 = arith.constant 0 : index
      %c0_22 = arith.constant 0 : index
      %39 = vector.load %arg5[%c0_21, %c0_22] : memref<1x96xf32, #tpu.memory_space<vmem>>, vector<1x96xf32>
      %40 = vector.broadcast %39 : vector<1x96xf32> to vector<34x96xf32>
      %41 = arith.addf %38, %40 : vector<34x96xf32>
      %42 = arith.truncf %41 : vector<34x96xf32> to vector<34x96xbf16>
      %c0_23 = arith.constant 0 : index
      %c0_24 = arith.constant 0 : index
      %43 = vector.load %arg8[%c0_23, %c0_24] : memref<34x96xbf16, #tpu.memory_space<vmem>>, vector<34x96xbf16>
      tpu.vector_store %arg8[%c0_23, %c0_24], %42 {strides = array<i32>} : memref<34x96xbf16, #tpu.memory_space<vmem>>, vector<34x96xbf16>,
    } else {
    }
    return
  }
  func.func @transform_0(%arg0: i32, %arg1: i32, %arg2: i32) -> (i32, i32) {
    %c0_i32 = arith.constant 0 : i32
    return %arg0, %arg2 : i32, i32
  }
  func.func @transform_1(%arg0: i32, %arg1: i32, %arg2: i32) -> (i32, i32) {
    %c0_i32 = arith.constant 0 : i32
    return %arg2, %arg1 : i32, i32
  }
  func.func @transform_2(%arg0: i32, %arg1: i32, %arg2: i32) -> (i32, i32) {
    %c0_i32 = arith.constant 0 : i32
    %c0_i32_0 = arith.constant 0 : i32
    return %c0_i32, %arg1 : i32, i32
  }
  func.func @transform_3(%arg0: i32, %arg1: i32, %arg2: i32) -> (i32, i32) {
    %c0_i32 = arith.constant 0 : i32
    %c0_i32_0 = arith.constant 0 : i32
    %c0_i32_1 = arith.constant 0 : i32
    return %c0_i32, %c0_i32_0 : i32, i32
  }
  func.func @transform_4(%arg0: i32, %arg1: i32, %arg2: i32) -> (i32, i32) {
    %c0_i32 = arith.constant 0 : i32
    %c0_i32_0 = arith.constant 0 : i32
    %c0_i32_1 = arith.constant 0 : i32
    return %c0_i32, %c0_i32_0 : i32, i32
  }
  func.func @transform_5(%arg0: i32, %arg1: i32, %arg2: i32) -> (i32, i32) {
    %c0_i32 = arith.constant 0 : i32
    return %arg0, %arg1 : i32, i32
  }
}

module attributes {stable_mosaic.version = 11 : i64} {
  func.func @_attn_kernel(%arg0: i32, %arg1: memref<1x17x96xbf16, #tpu.memory_space<vmem>>, %arg2: memref<1x17x32xbf16, #tpu.memory_space<vmem>>) attributes {dimension_semantics = [#tpu.dimension_semantics<parallel>], iteration_bounds = array<i64: 2>, scalar_prefetch = 0 : i64, scratch_operands = 0 : i64, tpu.core_type = #tpu.core_type<tc>, window_params = [{transform_indices = @transform_0, window_bounds = array<i64: 1, 17, 96>}, {transform_indices = @transform_1, window_bounds = array<i64: 1, 17, 32>}]} {
    %c0 = arith.constant 0 : index
    %c0_0 = arith.constant 0 : index
    %c0_1 = arith.constant 0 : index
    %0 = vector.load %arg1[%c0, %c0_0, %c0_1] : memref<1x17x96xbf16, #tpu.memory_space<vmem>>, vector<1x17x96xbf16>
    %1 = vector.shape_cast %0 : vector<1x17x96xbf16> to vector<17x96xbf16>
    %2 = vector.extract_strided_slice %1 {offsets = [0, 0], sizes = [17, 8], strides = [1, 1]} : vector<17x96xbf16> to vector<17x8xbf16>
    %3 = vector.extract_strided_slice %1 {offsets = [0, 32], sizes = [17, 8], strides = [1, 1]} : vector<17x96xbf16> to vector<17x8xbf16>
    %4 = vector.extract_strided_slice %1 {offsets = [0, 64], sizes = [17, 8], strides = [1, 1]} : vector<17x96xbf16> to vector<17x8xbf16>
    %cst = arith.constant dense<0.000000e+00> : vector<17x17xf32>
    %5 = tpu.matmul %2, %3, %cst {dimension_numbers = #tpu.dot_dimension_numbers<[1], [1], [0], [0], [0, 0, 1, 0], [], []>} : vector<17x8xbf16>, vector<17x8xbf16>, vector<17x17xf32> -> vector<17x17xf32>
    %cst_2 = arith.constant 0.353553385 : f32
    %6 = vector.broadcast %cst_2 : f32 to vector<17x17xf32>
    %7 = arith.mulf %5, %6 : vector<17x17xf32>
    %cst_3 = arith.constant dense<0xFF800000> : vector<17xf32>
    %8 = vector.multi_reduction <maximumf>, %7, %cst_3 [1] : vector<17x17xf32> to vector<17xf32>
    %9 = vector.shape_cast %8 : vector<17xf32> to vector<17x1xf32>
    %10 = vector.broadcast %9 : vector<17x1xf32> to vector<17x17xf32>
    %11 = arith.subf %7, %10 : vector<17x17xf32>
    %12 = math.exp %11 : vector<17x17xf32>
    %cst_4 = arith.constant dense<0.000000e+00> : vector<17xf32>
    %13 = vector.multi_reduction <add>, %12, %cst_4 [1] : vector<17x17xf32> to vector<17xf32>
    %14 = vector.shape_cast %13 : vector<17xf32> to vector<17x1xf32>
    %15 = tpu.reciprocal %14 {approx = true} : vector<17x1xf32> -> vector<17x1xf32>
    %16 = vector.broadcast %15 : vector<17x1xf32> to vector<17x17xf32>
    %17 = arith.mulf %12, %16 : vector<17x17xf32>
    %18 = arith.truncf %17 : vector<17x17xf32> to vector<17x17xbf16>
    %cst_5 = arith.constant dense<0.000000e+00> : vector<17x8xf32>
    %19 = tpu.matmul %18, %4, %cst_5 {dimension_numbers = #tpu.dot_dimension_numbers<[1], [0], [0], [1], [0, 0, 1, 1], [], []>} : vector<17x17xbf16>, vector<17x8xbf16>, vector<17x8xf32> -> vector<17x8xf32>
    %20 = vector.extract_strided_slice %1 {offsets = [0, 8], sizes = [17, 8], strides = [1, 1]} : vector<17x96xbf16> to vector<17x8xbf16>
    %21 = vector.extract_strided_slice %1 {offsets = [0, 40], sizes = [17, 8], strides = [1, 1]} : vector<17x96xbf16> to vector<17x8xbf16>
    %22 = vector.extract_strided_slice %1 {offsets = [0, 72], sizes = [17, 8], strides = [1, 1]} : vector<17x96xbf16> to vector<17x8xbf16>
    %cst_6 = arith.constant dense<0.000000e+00> : vector<17x17xf32>
    %23 = tpu.matmul %20, %21, %cst_6 {dimension_numbers = #tpu.dot_dimension_numbers<[1], [1], [0], [0], [0, 0, 1, 0], [], []>} : vector<17x8xbf16>, vector<17x8xbf16>, vector<17x17xf32> -> vector<17x17xf32>
    %cst_7 = arith.constant 0.353553385 : f32
    %24 = vector.broadcast %cst_7 : f32 to vector<17x17xf32>
    %25 = arith.mulf %23, %24 : vector<17x17xf32>
    %cst_8 = arith.constant dense<0xFF800000> : vector<17xf32>
    %26 = vector.multi_reduction <maximumf>, %25, %cst_8 [1] : vector<17x17xf32> to vector<17xf32>
    %27 = vector.shape_cast %26 : vector<17xf32> to vector<17x1xf32>
    %28 = vector.broadcast %27 : vector<17x1xf32> to vector<17x17xf32>
    %29 = arith.subf %25, %28 : vector<17x17xf32>
    %30 = math.exp %29 : vector<17x17xf32>
    %cst_9 = arith.constant dense<0.000000e+00> : vector<17xf32>
    %31 = vector.multi_reduction <add>, %30, %cst_9 [1] : vector<17x17xf32> to vector<17xf32>
    %32 = vector.shape_cast %31 : vector<17xf32> to vector<17x1xf32>
    %33 = tpu.reciprocal %32 {approx = true} : vector<17x1xf32> -> vector<17x1xf32>
    %34 = vector.broadcast %33 : vector<17x1xf32> to vector<17x17xf32>
    %35 = arith.mulf %30, %34 : vector<17x17xf32>
    %36 = arith.truncf %35 : vector<17x17xf32> to vector<17x17xbf16>
    %cst_10 = arith.constant dense<0.000000e+00> : vector<17x8xf32>
    %37 = tpu.matmul %36, %22, %cst_10 {dimension_numbers = #tpu.dot_dimension_numbers<[1], [0], [0], [1], [0, 0, 1, 1], [], []>} : vector<17x17xbf16>, vector<17x8xbf16>, vector<17x8xf32> -> vector<17x8xf32>
    %38 = vector.extract_strided_slice %1 {offsets = [0, 16], sizes = [17, 8], strides = [1, 1]} : vector<17x96xbf16> to vector<17x8xbf16>
    %39 = vector.extract_strided_slice %1 {offsets = [0, 48], sizes = [17, 8], strides = [1, 1]} : vector<17x96xbf16> to vector<17x8xbf16>
    %40 = vector.extract_strided_slice %1 {offsets = [0, 80], sizes = [17, 8], strides = [1, 1]} : vector<17x96xbf16> to vector<17x8xbf16>
    %cst_11 = arith.constant dense<0.000000e+00> : vector<17x17xf32>
    %41 = tpu.matmul %38, %39, %cst_11 {dimension_numbers = #tpu.dot_dimension_numbers<[1], [1], [0], [0], [0, 0, 1, 0], [], []>} : vector<17x8xbf16>, vector<17x8xbf16>, vector<17x17xf32> -> vector<17x17xf32>
    %cst_12 = arith.constant 0.353553385 : f32
    %42 = vector.broadcast %cst_12 : f32 to vector<17x17xf32>
    %43 = arith.mulf %41, %42 : vector<17x17xf32>
    %cst_13 = arith.constant dense<0xFF800000> : vector<17xf32>
    %44 = vector.multi_reduction <maximumf>, %43, %cst_13 [1] : vector<17x17xf32> to vector<17xf32>
    %45 = vector.shape_cast %44 : vector<17xf32> to vector<17x1xf32>
    %46 = vector.broadcast %45 : vector<17x1xf32> to vector<17x17xf32>
    %47 = arith.subf %43, %46 : vector<17x17xf32>
    %48 = math.exp %47 : vector<17x17xf32>
    %cst_14 = arith.constant dense<0.000000e+00> : vector<17xf32>
    %49 = vector.multi_reduction <add>, %48, %cst_14 [1] : vector<17x17xf32> to vector<17xf32>
    %50 = vector.shape_cast %49 : vector<17xf32> to vector<17x1xf32>
    %51 = tpu.reciprocal %50 {approx = true} : vector<17x1xf32> -> vector<17x1xf32>
    %52 = vector.broadcast %51 : vector<17x1xf32> to vector<17x17xf32>
    %53 = arith.mulf %48, %52 : vector<17x17xf32>
    %54 = arith.truncf %53 : vector<17x17xf32> to vector<17x17xbf16>
    %cst_15 = arith.constant dense<0.000000e+00> : vector<17x8xf32>
    %55 = tpu.matmul %54, %40, %cst_15 {dimension_numbers = #tpu.dot_dimension_numbers<[1], [0], [0], [1], [0, 0, 1, 1], [], []>} : vector<17x17xbf16>, vector<17x8xbf16>, vector<17x8xf32> -> vector<17x8xf32>
    %56 = vector.extract_strided_slice %1 {offsets = [0, 24], sizes = [17, 8], strides = [1, 1]} : vector<17x96xbf16> to vector<17x8xbf16>
    %57 = vector.extract_strided_slice %1 {offsets = [0, 56], sizes = [17, 8], strides = [1, 1]} : vector<17x96xbf16> to vector<17x8xbf16>
    %58 = vector.extract_strided_slice %1 {offsets = [0, 88], sizes = [17, 8], strides = [1, 1]} : vector<17x96xbf16> to vector<17x8xbf16>
    %cst_16 = arith.constant dense<0.000000e+00> : vector<17x17xf32>
    %59 = tpu.matmul %56, %57, %cst_16 {dimension_numbers = #tpu.dot_dimension_numbers<[1], [1], [0], [0], [0, 0, 1, 0], [], []>} : vector<17x8xbf16>, vector<17x8xbf16>, vector<17x17xf32> -> vector<17x17xf32>
    %cst_17 = arith.constant 0.353553385 : f32
    %60 = vector.broadcast %cst_17 : f32 to vector<17x17xf32>
    %61 = arith.mulf %59, %60 : vector<17x17xf32>
    %cst_18 = arith.constant dense<0xFF800000> : vector<17xf32>
    %62 = vector.multi_reduction <maximumf>, %61, %cst_18 [1] : vector<17x17xf32> to vector<17xf32>
    %63 = vector.shape_cast %62 : vector<17xf32> to vector<17x1xf32>
    %64 = vector.broadcast %63 : vector<17x1xf32> to vector<17x17xf32>
    %65 = arith.subf %61, %64 : vector<17x17xf32>
    %66 = math.exp %65 : vector<17x17xf32>
    %cst_19 = arith.constant dense<0.000000e+00> : vector<17xf32>
    %67 = vector.multi_reduction <add>, %66, %cst_19 [1] : vector<17x17xf32> to vector<17xf32>
    %68 = vector.shape_cast %67 : vector<17xf32> to vector<17x1xf32>
    %69 = tpu.reciprocal %68 {approx = true} : vector<17x1xf32> -> vector<17x1xf32>
    %70 = vector.broadcast %69 : vector<17x1xf32> to vector<17x17xf32>
    %71 = arith.mulf %66, %70 : vector<17x17xf32>
    %72 = arith.truncf %71 : vector<17x17xf32> to vector<17x17xbf16>
    %cst_20 = arith.constant dense<0.000000e+00> : vector<17x8xf32>
    %73 = tpu.matmul %72, %58, %cst_20 {dimension_numbers = #tpu.dot_dimension_numbers<[1], [0], [0], [1], [0, 0, 1, 1], [], []>} : vector<17x17xbf16>, vector<17x8xbf16>, vector<17x8xf32> -> vector<17x8xf32>
    %74 = tpu.concatenate %19, %37, %55, %73 in 1 : vector<17x8xf32>, vector<17x8xf32>, vector<17x8xf32>, vector<17x8xf32> -> vector<17x32xf32>
    %75 = arith.truncf %74 : vector<17x32xf32> to vector<17x32xbf16>
    %c0_21 = arith.constant 0 : index
    %c0_22 = arith.constant 0 : index
    %c0_23 = arith.constant 0 : index
    %76 = vector.load %arg2[%c0_21, %c0_22, %c0_23] : memref<1x17x32xbf16, #tpu.memory_space<vmem>>, vector<1x17x32xbf16>
    %77 = vector.shape_cast %76 : vector<1x17x32xbf16> to vector<17x32xbf16>
    %78 = vector.shape_cast %75 : vector<17x32xbf16> to vector<1x17x32xbf16>
    tpu.vector_store %arg2[%c0_21, %c0_22, %c0_23], %78 {strides = array<i32>} : memref<1x17x32xbf16, #tpu.memory_space<vmem>>, vector<1x17x32xbf16>,
    return
  }
  func.func @transform_0(%arg0: i32) -> (i32, i32, i32) {
    %c0_i32 = arith.constant 0 : i32
    %c0_i32_0 = arith.constant 0 : i32
    %c0_i32_1 = arith.constant 0 : i32
    return %arg0, %c0_i32, %c0_i32_0 : i32, i32, i32
  }
  func.func @transform_1(%arg0: i32) -> (i32, i32, i32) {
    %c0_i32 = arith.constant 0 : i32
    %c0_i32_0 = arith.constant 0 : i32
    %c0_i32_1 = arith.constant 0 : i32
    return %arg0, %c0_i32, %c0_i32_0 : i32, i32, i32
  }
}

module attributes {stable_mosaic.version = 11 : i64} {
  func.func @_fused_linear_kernel(%arg0: i32, %arg1: i32, %arg2: i32, %arg3: memref<32x48xbf16, #tpu.memory_space<vmem>>, %arg4: memref<48x32xbf16, #tpu.memory_space<vmem>>, %arg5: memref<1x32xf32, #tpu.memory_space<vmem>>, %arg6: memref<32x32xbf16, #tpu.memory_space<vmem>>, %arg7: memref<32x32xf32, #tpu.memory_space<vmem>>) attributes {dimension_semantics = [#tpu.dimension_semantics<parallel>, #tpu.dimension_semantics<parallel>, #tpu.dimension_semantics<arbitrary>], iteration_bounds = array<i64: 1, 1, 1>, scalar_prefetch = 0 : i64, scratch_operands = 1 : i64, tpu.core_type = #tpu.core_type<tc>, window_params = [{transform_indices = @transform_0, window_bounds = array<i64: 32, 48>}, {transform_indices = @transform_1, window_bounds = array<i64: 48, 32>}, {transform_indices = @transform_2, window_bounds = array<i64: 1, 32>}, {transform_indices = @transform_3, window_bounds = array<i64: 32, 32>}]} {
    %c0_i32 = arith.constant 0 : i32
    %0 = arith.cmpi eq, %arg2, %c0_i32 : i32
    %1 = arith.extui %0 : i1 to i32
    %c0_i32_0 = arith.constant 0 : i32
    %2 = arith.cmpi ne, %1, %c0_i32_0 : i32
    scf.if %2 {
      %cst_10 = arith.constant 0.000000e+00 : f32
      %12 = vector.broadcast %cst_10 : f32 to vector<32x32xf32>
      %c0_11 = arith.constant 0 : index
      %c0_12 = arith.constant 0 : index
      %13 = vector.load %arg7[%c0_11, %c0_12] : memref<32x32xf32, #tpu.memory_space<vmem>>, vector<32x32xf32>
      tpu.vector_store %arg7[%c0_11, %c0_12], %12 {strides = array<i32>} : memref<32x32xf32, #tpu.memory_space<vmem>>, vector<32x32xf32>,
    } else {
    }
    %c0 = arith.constant 0 : index
    %c0_1 = arith.constant 0 : index
    %3 = vector.load %arg3[%c0, %c0_1] : memref<32x48xbf16, #tpu.memory_space<vmem>>, vector<32x48xbf16>
    %c0_2 = arith.constant 0 : index
    %c0_3 = arith.constant 0 : index
    %4 = vector.load %arg7[%c0_2, %c0_3] : memref<32x32xf32, #tpu.memory_space<vmem>>, vector<32x32xf32>
    %c0_4 = arith.constant 0 : index
    %c0_5 = arith.constant 0 : index
    %5 = vector.load %arg4[%c0_4, %c0_5] : memref<48x32xbf16, #tpu.memory_space<vmem>>, vector<48x32xbf16>
    %cst = arith.constant dense<0.000000e+00> : vector<32x32xf32>
    %6 = tpu.matmul %3, %5, %cst {dimension_numbers = #tpu.dot_dimension_numbers<[1], [0], [0], [1], [0, 0, 1, 1], [], []>} : vector<32x48xbf16>, vector<48x32xbf16>, vector<32x32xf32> -> vector<32x32xf32>
    %7 = arith.addf %4, %6 : vector<32x32xf32>
    %c0_6 = arith.constant 0 : index
    %c0_7 = arith.constant 0 : index
    %8 = vector.load %arg7[%c0_6, %c0_7] : memref<32x32xf32, #tpu.memory_space<vmem>>, vector<32x32xf32>
    tpu.vector_store %arg7[%c0_6, %c0_7], %7 {strides = array<i32>} : memref<32x32xf32, #tpu.memory_space<vmem>>, vector<32x32xf32>,
    %c0_i32_8 = arith.constant 0 : i32
    %9 = arith.cmpi eq, %arg2, %c0_i32_8 : i32
    %10 = arith.extui %9 : i1 to i32
    %c0_i32_9 = arith.constant 0 : i32
    %11 = arith.cmpi ne, %10, %c0_i32_9 : i32
    scf.if %11 {
      %c0_10 = arith.constant 0 : index
      %c0_11 = arith.constant 0 : index
      %12 = vector.load %arg7[%c0_10, %c0_11] : memref<32x32xf32, #tpu.memory_space<vmem>>, vector<32x32xf32>
      %c0_12 = arith.constant 0 : index
      %c0_13 = arith.constant 0 : index
      %13 = vector.load %arg5[%c0_12, %c0_13] : memref<1x32xf32, #tpu.memory_space<vmem>>, vector<1x32xf32>
      %14 = vector.broadcast %13 : vector<1x32xf32> to vector<32x32xf32>
      %15 = arith.addf %12, %14 : vector<32x32xf32>
      %16 = arith.truncf %15 : vector<32x32xf32> to vector<32x32xbf16>
      %c0_14 = arith.constant 0 : index
      %c0_15 = arith.constant 0 : index
      %17 = vector.load %arg6[%c0_14, %c0_15] : memref<32x32xbf16, #tpu.memory_space<vmem>>, vector<32x32xbf16>
      tpu.vector_store %arg6[%c0_14, %c0_15], %16 {strides = array<i32>} : memref<32x32xbf16, #tpu.memory_space<vmem>>, vector<32x32xbf16>,
    } else {
    }
    return
  }
  func.func @transform_0(%arg0: i32, %arg1: i32, %arg2: i32) -> (i32, i32) {
    %c0_i32 = arith.constant 0 : i32
    return %arg0, %arg2 : i32, i32
  }
  func.func @transform_1(%arg0: i32, %arg1: i32, %arg2: i32) -> (i32, i32) {
    %c0_i32 = arith.constant 0 : i32
    return %arg2, %arg1 : i32, i32
  }
  func.func @transform_2(%arg0: i32, %arg1: i32, %arg2: i32) -> (i32, i32) {
    %c0_i32 = arith.constant 0 : i32
    %c0_i32_0 = arith.constant 0 : i32
    return %c0_i32, %arg1 : i32, i32
  }
  func.func @transform_3(%arg0: i32, %arg1: i32, %arg2: i32) -> (i32, i32) {
    %c0_i32 = arith.constant 0 : i32
    return %arg0, %arg1 : i32, i32
  }
}

module attributes {stable_mosaic.version = 11 : i64} {
  func.func @_fused_linear_kernel(%arg0: i32, %arg1: i32, %arg2: i32, %arg3: memref<34x32xbf16, #tpu.memory_space<vmem>>, %arg4: memref<32x32xbf16, #tpu.memory_space<vmem>>, %arg5: memref<1x32xf32, #tpu.memory_space<vmem>>, %arg6: memref<34x32xbf16, #tpu.memory_space<vmem>>, %arg7: memref<34x32xbf16, #tpu.memory_space<vmem>>, %arg8: memref<34x32xf32, #tpu.memory_space<vmem>>) attributes {dimension_semantics = [#tpu.dimension_semantics<parallel>, #tpu.dimension_semantics<parallel>, #tpu.dimension_semantics<arbitrary>], iteration_bounds = array<i64: 1, 1, 1>, scalar_prefetch = 0 : i64, scratch_operands = 1 : i64, tpu.core_type = #tpu.core_type<tc>, window_params = [{transform_indices = @transform_0, window_bounds = array<i64: 34, 32>}, {transform_indices = @transform_1, window_bounds = array<i64: 32, 32>}, {transform_indices = @transform_2, window_bounds = array<i64: 1, 32>}, {transform_indices = @transform_3, window_bounds = array<i64: 34, 32>}, {transform_indices = @transform_4, window_bounds = array<i64: 34, 32>}]} {
    %c0_i32 = arith.constant 0 : i32
    %0 = arith.cmpi eq, %arg2, %c0_i32 : i32
    %1 = arith.extui %0 : i1 to i32
    %c0_i32_0 = arith.constant 0 : i32
    %2 = arith.cmpi ne, %1, %c0_i32_0 : i32
    scf.if %2 {
      %cst_10 = arith.constant 0.000000e+00 : f32
      %12 = vector.broadcast %cst_10 : f32 to vector<34x32xf32>
      %c0_11 = arith.constant 0 : index
      %c0_12 = arith.constant 0 : index
      %13 = vector.load %arg8[%c0_11, %c0_12] : memref<34x32xf32, #tpu.memory_space<vmem>>, vector<34x32xf32>
      tpu.vector_store %arg8[%c0_11, %c0_12], %12 {strides = array<i32>} : memref<34x32xf32, #tpu.memory_space<vmem>>, vector<34x32xf32>,
    } else {
    }
    %c0 = arith.constant 0 : index
    %c0_1 = arith.constant 0 : index
    %3 = vector.load %arg3[%c0, %c0_1] : memref<34x32xbf16, #tpu.memory_space<vmem>>, vector<34x32xbf16>
    %c0_2 = arith.constant 0 : index
    %c0_3 = arith.constant 0 : index
    %4 = vector.load %arg8[%c0_2, %c0_3] : memref<34x32xf32, #tpu.memory_space<vmem>>, vector<34x32xf32>
    %c0_4 = arith.constant 0 : index
    %c0_5 = arith.constant 0 : index
    %5 = vector.load %arg4[%c0_4, %c0_5] : memref<32x32xbf16, #tpu.memory_space<vmem>>, vector<32x32xbf16>
    %cst = arith.constant dense<0.000000e+00> : vector<34x32xf32>
    %6 = tpu.matmul %3, %5, %cst {dimension_numbers = #tpu.dot_dimension_numbers<[1], [0], [0], [1], [0, 0, 1, 1], [], []>} : vector<34x32xbf16>, vector<32x32xbf16>, vector<34x32xf32> -> vector<34x32xf32>
    %7 = arith.addf %4, %6 : vector<34x32xf32>
    %c0_6 = arith.constant 0 : index
    %c0_7 = arith.constant 0 : index
    %8 = vector.load %arg8[%c0_6, %c0_7] : memref<34x32xf32, #tpu.memory_space<vmem>>, vector<34x32xf32>
    tpu.vector_store %arg8[%c0_6, %c0_7], %7 {strides = array<i32>} : memref<34x32xf32, #tpu.memory_space<vmem>>, vector<34x32xf32>,
    %c0_i32_8 = arith.constant 0 : i32
    %9 = arith.cmpi eq, %arg2, %c0_i32_8 : i32
    %10 = arith.extui %9 : i1 to i32
    %c0_i32_9 = arith.constant 0 : i32
    %11 = arith.cmpi ne, %10, %c0_i32_9 : i32
    scf.if %11 {
      %c0_10 = arith.constant 0 : index
      %c0_11 = arith.constant 0 : index
      %12 = vector.load %arg8[%c0_10, %c0_11] : memref<34x32xf32, #tpu.memory_space<vmem>>, vector<34x32xf32>
      %c0_12 = arith.constant 0 : index
      %c0_13 = arith.constant 0 : index
      %13 = vector.load %arg5[%c0_12, %c0_13] : memref<1x32xf32, #tpu.memory_space<vmem>>, vector<1x32xf32>
      %14 = vector.broadcast %13 : vector<1x32xf32> to vector<34x32xf32>
      %15 = arith.addf %12, %14 : vector<34x32xf32>
      %c0_14 = arith.constant 0 : index
      %c0_15 = arith.constant 0 : index
      %16 = vector.load %arg6[%c0_14, %c0_15] : memref<34x32xbf16, #tpu.memory_space<vmem>>, vector<34x32xbf16>
      %17 = arith.extf %16 : vector<34x32xbf16> to vector<34x32xf32>
      %18 = arith.addf %15, %17 : vector<34x32xf32>
      %19 = arith.truncf %18 : vector<34x32xf32> to vector<34x32xbf16>
      %c0_16 = arith.constant 0 : index
      %c0_17 = arith.constant 0 : index
      %20 = vector.load %arg7[%c0_16, %c0_17] : memref<34x32xbf16, #tpu.memory_space<vmem>>, vector<34x32xbf16>
      tpu.vector_store %arg7[%c0_16, %c0_17], %19 {strides = array<i32>} : memref<34x32xbf16, #tpu.memory_space<vmem>>, vector<34x32xbf16>,
    } else {
    }
    return
  }
  func.func @transform_0(%arg0: i32, %arg1: i32, %arg2: i32) -> (i32, i32) {
    %c0_i32 = arith.constant 0 : i32
    return %arg0, %arg2 : i32, i32
  }
  func.func @transform_1(%arg0: i32, %arg1: i32, %arg2: i32) -> (i32, i32) {
    %c0_i32 = arith.constant 0 : i32
    return %arg2, %arg1 : i32, i32
  }
  func.func @transform_2(%arg0: i32, %arg1: i32, %arg2: i32) -> (i32, i32) {
    %c0_i32 = arith.constant 0 : i32
    %c0_i32_0 = arith.constant 0 : i32
    return %c0_i32, %arg1 : i32, i32
  }
  func.func @transform_3(%arg0: i32, %arg1: i32, %arg2: i32) -> (i32, i32) {
    %c0_i32 = arith.constant 0 : i32
    return %arg0, %arg1 : i32, i32
  }
  func.func @transform_4(%arg0: i32, %arg1: i32, %arg2: i32) -> (i32, i32) {
    %c0_i32 = arith.constant 0 : i32
    return %arg0, %arg1 : i32, i32
  }
}

module attributes {stable_mosaic.version = 11 : i64} {
  func.func @_fused_linear_kernel(%arg0: i32, %arg1: i32, %arg2: i32, %arg3: memref<34x128xbf16, #tpu.memory_space<vmem>>, %arg4: memref<128x32xbf16, #tpu.memory_space<vmem>>, %arg5: memref<1x32xf32, #tpu.memory_space<vmem>>, %arg6: memref<34x32xbf16, #tpu.memory_space<vmem>>, %arg7: memref<34x32xbf16, #tpu.memory_space<vmem>>, %arg8: memref<34x32xf32, #tpu.memory_space<vmem>>) attributes {dimension_semantics = [#tpu.dimension_semantics<parallel>, #tpu.dimension_semantics<parallel>, #tpu.dimension_semantics<arbitrary>], iteration_bounds = array<i64: 1, 1, 1>, scalar_prefetch = 0 : i64, scratch_operands = 1 : i64, tpu.core_type = #tpu.core_type<tc>, window_params = [{transform_indices = @transform_0, window_bounds = array<i64: 34, 128>}, {transform_indices = @transform_1, window_bounds = array<i64: 128, 32>}, {transform_indices = @transform_2, window_bounds = array<i64: 1, 32>}, {transform_indices = @transform_3, window_bounds = array<i64: 34, 32>}, {transform_indices = @transform_4, window_bounds = array<i64: 34, 32>}]} {
    %c0_i32 = arith.constant 0 : i32
    %0 = arith.cmpi eq, %arg2, %c0_i32 : i32
    %1 = arith.extui %0 : i1 to i32
    %c0_i32_0 = arith.constant 0 : i32
    %2 = arith.cmpi ne, %1, %c0_i32_0 : i32
    scf.if %2 {
      %cst_10 = arith.constant 0.000000e+00 : f32
      %12 = vector.broadcast %cst_10 : f32 to vector<34x32xf32>
      %c0_11 = arith.constant 0 : index
      %c0_12 = arith.constant 0 : index
      %13 = vector.load %arg8[%c0_11, %c0_12] : memref<34x32xf32, #tpu.memory_space<vmem>>, vector<34x32xf32>
      tpu.vector_store %arg8[%c0_11, %c0_12], %12 {strides = array<i32>} : memref<34x32xf32, #tpu.memory_space<vmem>>, vector<34x32xf32>,
    } else {
    }
    %c0 = arith.constant 0 : index
    %c0_1 = arith.constant 0 : index
    %3 = vector.load %arg3[%c0, %c0_1] : memref<34x128xbf16, #tpu.memory_space<vmem>>, vector<34x128xbf16>
    %c0_2 = arith.constant 0 : index
    %c0_3 = arith.constant 0 : index
    %4 = vector.load %arg8[%c0_2, %c0_3] : memref<34x32xf32, #tpu.memory_space<vmem>>, vector<34x32xf32>
    %c0_4 = arith.constant 0 : index
    %c0_5 = arith.constant 0 : index
    %5 = vector.load %arg4[%c0_4, %c0_5] : memref<128x32xbf16, #tpu.memory_space<vmem>>, vector<128x32xbf16>
    %cst = arith.constant dense<0.000000e+00> : vector<34x32xf32>
    %6 = tpu.matmul %3, %5, %cst {dimension_numbers = #tpu.dot_dimension_numbers<[1], [0], [0], [1], [0, 0, 1, 1], [], []>} : vector<34x128xbf16>, vector<128x32xbf16>, vector<34x32xf32> -> vector<34x32xf32>
    %7 = arith.addf %4, %6 : vector<34x32xf32>
    %c0_6 = arith.constant 0 : index
    %c0_7 = arith.constant 0 : index
    %8 = vector.load %arg8[%c0_6, %c0_7] : memref<34x32xf32, #tpu.memory_space<vmem>>, vector<34x32xf32>
    tpu.vector_store %arg8[%c0_6, %c0_7], %7 {strides = array<i32>} : memref<34x32xf32, #tpu.memory_space<vmem>>, vector<34x32xf32>,
    %c0_i32_8 = arith.constant 0 : i32
    %9 = arith.cmpi eq, %arg2, %c0_i32_8 : i32
    %10 = arith.extui %9 : i1 to i32
    %c0_i32_9 = arith.constant 0 : i32
    %11 = arith.cmpi ne, %10, %c0_i32_9 : i32
    scf.if %11 {
      %c0_10 = arith.constant 0 : index
      %c0_11 = arith.constant 0 : index
      %12 = vector.load %arg8[%c0_10, %c0_11] : memref<34x32xf32, #tpu.memory_space<vmem>>, vector<34x32xf32>
      %c0_12 = arith.constant 0 : index
      %c0_13 = arith.constant 0 : index
      %13 = vector.load %arg5[%c0_12, %c0_13] : memref<1x32xf32, #tpu.memory_space<vmem>>, vector<1x32xf32>
      %14 = vector.broadcast %13 : vector<1x32xf32> to vector<34x32xf32>
      %15 = arith.addf %12, %14 : vector<34x32xf32>
      %c0_14 = arith.constant 0 : index
      %c0_15 = arith.constant 0 : index
      %16 = vector.load %arg6[%c0_14, %c0_15] : memref<34x32xbf16, #tpu.memory_space<vmem>>, vector<34x32xbf16>
      %17 = arith.extf %16 : vector<34x32xbf16> to vector<34x32xf32>
      %18 = arith.addf %15, %17 : vector<34x32xf32>
      %19 = arith.truncf %18 : vector<34x32xf32> to vector<34x32xbf16>
      %c0_16 = arith.constant 0 : index
      %c0_17 = arith.constant 0 : index
      %20 = vector.load %arg7[%c0_16, %c0_17] : memref<34x32xbf16, #tpu.memory_space<vmem>>, vector<34x32xbf16>
      tpu.vector_store %arg7[%c0_16, %c0_17], %19 {strides = array<i32>} : memref<34x32xbf16, #tpu.memory_space<vmem>>, vector<34x32xbf16>,
    } else {
    }
    return
  }
  func.func @transform_0(%arg0: i32, %arg1: i32, %arg2: i32) -> (i32, i32) {
    %c0_i32 = arith.constant 0 : i32
    return %arg0, %arg2 : i32, i32
  }
  func.func @transform_1(%arg0: i32, %arg1: i32, %arg2: i32) -> (i32, i32) {
    %c0_i32 = arith.constant 0 : i32
    return %arg2, %arg1 : i32, i32
  }
  func.func @transform_2(%arg0: i32, %arg1: i32, %arg2: i32) -> (i32, i32) {
    %c0_i32 = arith.constant 0 : i32
    %c0_i32_0 = arith.constant 0 : i32
    return %c0_i32, %arg1 : i32, i32
  }
  func.func @transform_3(%arg0: i32, %arg1: i32, %arg2: i32) -> (i32, i32) {
    %c0_i32 = arith.constant 0 : i32
    return %arg0, %arg1 : i32, i32
  }
  func.func @transform_4(%arg0: i32, %arg1: i32, %arg2: i32) -> (i32, i32) {
    %c0_i32 = arith.constant 0 : i32
    return %arg0, %arg1 : i32, i32
  }
}

module attributes {stable_mosaic.version = 11 : i64} {
  func.func @_fused_linear_kernel(%arg0: i32, %arg1: i32, %arg2: i32, %arg3: memref<34x32xbf16, #tpu.memory_space<vmem>>, %arg4: memref<32x128xbf16, #tpu.memory_space<vmem>>, %arg5: memref<1x128xf32, #tpu.memory_space<vmem>>, %arg6: memref<1x32xf32, #tpu.memory_space<vmem>>, %arg7: memref<1x32xf32, #tpu.memory_space<vmem>>, %arg8: memref<34x128xbf16, #tpu.memory_space<vmem>>, %arg9: memref<34x128xf32, #tpu.memory_space<vmem>>) attributes {dimension_semantics = [#tpu.dimension_semantics<parallel>, #tpu.dimension_semantics<parallel>, #tpu.dimension_semantics<arbitrary>], iteration_bounds = array<i64: 1, 1, 1>, scalar_prefetch = 0 : i64, scratch_operands = 1 : i64, tpu.core_type = #tpu.core_type<tc>, window_params = [{transform_indices = @transform_0, window_bounds = array<i64: 34, 32>}, {transform_indices = @transform_1, window_bounds = array<i64: 32, 128>}, {transform_indices = @transform_2, window_bounds = array<i64: 1, 128>}, {pipeline_mode = #tpu.pipeline_mode<synchronous>, transform_indices = @transform_3, window_bounds = array<i64: 1, 32>}, {pipeline_mode = #tpu.pipeline_mode<synchronous>, transform_indices = @transform_4, window_bounds = array<i64: 1, 32>}, {transform_indices = @transform_5, window_bounds = array<i64: 34, 128>}]} {
    %c0_i32 = arith.constant 0 : i32
    %0 = arith.cmpi eq, %arg2, %c0_i32 : i32
    %1 = arith.extui %0 : i1 to i32
    %c0_i32_0 = arith.constant 0 : i32
    %2 = arith.cmpi ne, %1, %c0_i32_0 : i32
    scf.if %2 {
      %cst_19 = arith.constant 0.000000e+00 : f32
      %38 = vector.broadcast %cst_19 : f32 to vector<34x128xf32>
      %c0_20 = arith.constant 0 : index
      %c0_21 = arith.constant 0 : index
      %39 = vector.load %arg9[%c0_20, %c0_21] : memref<34x128xf32, #tpu.memory_space<vmem>>, vector<34x128xf32>
      tpu.vector_store %arg9[%c0_20, %c0_21], %38 {strides = array<i32>} : memref<34x128xf32, #tpu.memory_space<vmem>>, vector<34x128xf32>,
    } else {
    }
    %c0 = arith.constant 0 : index
    %c0_1 = arith.constant 0 : index
    %3 = vector.load %arg3[%c0, %c0_1] : memref<34x32xbf16, #tpu.memory_space<vmem>>, vector<34x32xbf16>
    %4 = arith.extf %3 : vector<34x32xbf16> to vector<34x32xf32>
    %cst = arith.constant dense<0.000000e+00> : vector<34xf32>
    %5 = vector.multi_reduction <add>, %4, %cst [1] : vector<34x32xf32> to vector<34xf32>
    %6 = vector.shape_cast %5 : vector<34xf32> to vector<34x1xf32>
    %cst_2 = arith.constant 3.200000e+01 : f32
    %7 = vector.broadcast %cst_2 : f32 to vector<34x1xf32>
    %8 = arith.divf %6, %7 : vector<34x1xf32>
    %9 = vector.broadcast %8 : vector<34x1xf32> to vector<34x32xf32>
    %10 = arith.subf %4, %9 : vector<34x32xf32>
    %11 = arith.mulf %10, %10 : vector<34x32xf32>
    %cst_3 = arith.constant dense<0.000000e+00> : vector<34xf32>
    %12 = vector.multi_reduction <add>, %11, %cst_3 [1] : vector<34x32xf32> to vector<34xf32>
    %13 = vector.shape_cast %12 : vector<34xf32> to vector<34x1xf32>
    %cst_4 = arith.constant 3.200000e+01 : f32
    %14 = vector.broadcast %cst_4 : f32 to vector<34x1xf32>
    %15 = arith.divf %13, %14 : vector<34x1xf32>
    %16 = vector.broadcast %8 : vector<34x1xf32> to vector<34x32xf32>
    %17 = arith.subf %4, %16 : vector<34x32xf32>
    %cst_5 = arith.constant 9.99999974E-6 : f32
    %18 = vector.broadcast %cst_5 : f32 to vector<34x1xf32>
    %19 = arith.addf %15, %18 : vector<34x1xf32>
    %20 = math.rsqrt %19 : vector<34x1xf32>
    %21 = vector.broadcast %20 : vector<34x1xf32> to vector<34x32xf32>
    %22 = arith.mulf %17, %21 : vector<34x32xf32>
    %c0_6 = arith.constant 0 : index
    %c0_7 = arith.constant 0 : index
    %23 = vector.load %arg6[%c0_6, %c0_7] : memref<1x32xf32, #tpu.memory_space<vmem>>, vector<1x32xf32>
    %24 = vector.broadcast %23 : vector<1x32xf32> to vector<34x32xf32>
    %25 = arith.mulf %22, %24 : vector<34x32xf32>
    %c0_8 = arith.constant 0 : index
    %c0_9 = arith.constant 0 : index
    %26 = vector.load %arg7[%c0_8, %c0_9] : memref<1x32xf32, #tpu.memory_space<vmem>>, vector<1x32xf32>
    %27 = vector.broadcast %26 : vector<1x32xf32> to vector<34x32xf32>
    %28 = arith.addf %25, %27 : vector<34x32xf32>
    %29 = arith.truncf %28 : vector<34x32xf32> to vector<34x32xbf16>
    %c0_10 = arith.constant 0 : index
    %c0_11 = arith.constant 0 : index
    %30 = vector.load %arg9[%c0_10, %c0_11] : memref<34x128xf32, #tpu.memory_space<vmem>>, vector<34x128xf32>
    %c0_12 = arith.constant 0 : index
    %c0_13 = arith.constant 0 : index
    %31 = vector.load %arg4[%c0_12, %c0_13] : memref<32x128xbf16, #tpu.memory_space<vmem>>, vector<32x128xbf16>
    %cst_14 = arith.constant dense<0.000000e+00> : vector<34x128xf32>
    %32 = tpu.matmul %29, %31, %cst_14 {dimension_numbers = #tpu.dot_dimension_numbers<[1], [0], [0], [1], [0, 0, 1, 1], [], []>} : vector<34x32xbf16>, vector<32x128xbf16>, vector<34x128xf32> -> vector<34x128xf32>
    %33 = arith.addf %30, %32 : vector<34x128xf32>
    %c0_15 = arith.constant 0 : index
    %c0_16 = arith.constant 0 : index
    %34 = vector.load %arg9[%c0_15, %c0_16] : memref<34x128xf32, #tpu.memory_space<vmem>>, vector<34x128xf32>
    tpu.vector_store %arg9[%c0_15, %c0_16], %33 {strides = array<i32>} : memref<34x128xf32, #tpu.memory_space<vmem>>, vector<34x128xf32>,
    %c0_i32_17 = arith.constant 0 : i32
    %35 = arith.cmpi eq, %arg2, %c0_i32_17 : i32
    %36 = arith.extui %35 : i1 to i32
    %c0_i32_18 = arith.constant 0 : i32
    %37 = arith.cmpi ne, %36, %c0_i32_18 : i32
    scf.if %37 {
      %c0_19 = arith.constant 0 : index
      %c0_20 = arith.constant 0 : index
      %38 = vector.load %arg9[%c0_19, %c0_20] : memref<34x128xf32, #tpu.memory_space<vmem>>, vector<34x128xf32>
      %c0_21 = arith.constant 0 : index
      %c0_22 = arith.constant 0 : index
      %39 = vector.load %arg5[%c0_21, %c0_22] : memref<1x128xf32, #tpu.memory_space<vmem>>, vector<1x128xf32>
      %40 = vector.broadcast %39 : vector<1x128xf32> to vector<34x128xf32>
      %41 = arith.addf %38, %40 : vector<34x128xf32>
      %cst_23 = arith.constant 5.000000e-01 : f32
      %42 = vector.broadcast %cst_23 : f32 to vector<34x128xf32>
      %43 = arith.mulf %42, %41 : vector<34x128xf32>
      %cst_24 = arith.constant 0.707106769 : f32
      %44 = vector.broadcast %cst_24 : f32 to vector<34x128xf32>
      %45 = arith.mulf %41, %44 : vector<34x128xf32>
      %46 = math.erf %45 : vector<34x128xf32>
      %cst_25 = arith.constant 1.000000e+00 : f32
      %47 = vector.broadcast %cst_25 : f32 to vector<34x128xf32>
      %48 = arith.addf %47, %46 : vector<34x128xf32>
      %49 = arith.mulf %43, %48 : vector<34x128xf32>
      %50 = arith.truncf %49 : vector<34x128xf32> to vector<34x128xbf16>
      %c0_26 = arith.constant 0 : index
      %c0_27 = arith.constant 0 : index
      %51 = vector.load %arg8[%c0_26, %c0_27] : memref<34x128xbf16, #tpu.memory_space<vmem>>, vector<34x128xbf16>
      tpu.vector_store %arg8[%c0_26, %c0_27], %50 {strides = array<i32>} : memref<34x128xbf16, #tpu.memory_space<vmem>>, vector<34x128xbf16>,
    } else {
    }
    return
  }
  func.func @transform_0(%arg0: i32, %arg1: i32, %arg2: i32) -> (i32, i32) {
    %c0_i32 = arith.constant 0 : i32
    return %arg0, %arg2 : i32, i32
  }
  func.func @transform_1(%arg0: i32, %arg1: i32, %arg2: i32) -> (i32, i32) {
    %c0_i32 = arith.constant 0 : i32
    return %arg2, %arg1 : i32, i32
  }
  func.func @transform_2(%arg0: i32, %arg1: i32, %arg2: i32) -> (i32, i32) {
    %c0_i32 = arith.constant 0 : i32
    %c0_i32_0 = arith.constant 0 : i32
    return %c0_i32, %arg1 : i32, i32
  }
  func.func @transform_3(%arg0: i32, %arg1: i32, %arg2: i32) -> (i32, i32) {
    %c0_i32 = arith.constant 0 : i32
    %c0_i32_0 = arith.constant 0 : i32
    %c0_i32_1 = arith.constant 0 : i32
    return %c0_i32, %c0_i32_0 : i32, i32
  }
  func.func @transform_4(%arg0: i32, %arg1: i32, %arg2: i32) -> (i32, i32) {
    %c0_i32 = arith.constant 0 : i32
    %c0_i32_0 = arith.constant 0 : i32
    %c0_i32_1 = arith.constant 0 : i32
    return %c0_i32, %c0_i32_0 : i32, i32
  }
  func.func @transform_5(%arg0: i32, %arg1: i32, %arg2: i32) -> (i32, i32) {
    %c0_i32 = arith.constant 0 : i32
    return %arg0, %arg1 : i32, i32
  }
}

module attributes {stable_mosaic.version = 11 : i64} {
  func.func @_fused_linear_kernel(%arg0: i32, %arg1: i32, %arg2: i32, %arg3: memref<2x32xbf16, #tpu.memory_space<vmem>>, %arg4: memref<32x10xbf16, #tpu.memory_space<vmem>>, %arg5: memref<1x10xf32, #tpu.memory_space<vmem>>, %arg6: memref<1x32xf32, #tpu.memory_space<vmem>>, %arg7: memref<1x32xf32, #tpu.memory_space<vmem>>, %arg8: memref<2x10xf32, #tpu.memory_space<vmem>>, %arg9: memref<2x10xf32, #tpu.memory_space<vmem>>) attributes {dimension_semantics = [#tpu.dimension_semantics<parallel>, #tpu.dimension_semantics<parallel>, #tpu.dimension_semantics<arbitrary>], iteration_bounds = array<i64: 1, 1, 1>, scalar_prefetch = 0 : i64, scratch_operands = 1 : i64, tpu.core_type = #tpu.core_type<tc>, window_params = [{transform_indices = @transform_0, window_bounds = array<i64: 2, 32>}, {transform_indices = @transform_1, window_bounds = array<i64: 32, 10>}, {transform_indices = @transform_2, window_bounds = array<i64: 1, 10>}, {pipeline_mode = #tpu.pipeline_mode<synchronous>, transform_indices = @transform_3, window_bounds = array<i64: 1, 32>}, {pipeline_mode = #tpu.pipeline_mode<synchronous>, transform_indices = @transform_4, window_bounds = array<i64: 1, 32>}, {transform_indices = @transform_5, window_bounds = array<i64: 2, 10>}]} {
    %c0_i32 = arith.constant 0 : i32
    %0 = arith.cmpi eq, %arg2, %c0_i32 : i32
    %1 = arith.extui %0 : i1 to i32
    %c0_i32_0 = arith.constant 0 : i32
    %2 = arith.cmpi ne, %1, %c0_i32_0 : i32
    scf.if %2 {
      %cst_19 = arith.constant 0.000000e+00 : f32
      %38 = vector.broadcast %cst_19 : f32 to vector<2x10xf32>
      %c0_20 = arith.constant 0 : index
      %c0_21 = arith.constant 0 : index
      %39 = vector.load %arg9[%c0_20, %c0_21] : memref<2x10xf32, #tpu.memory_space<vmem>>, vector<2x10xf32>
      tpu.vector_store %arg9[%c0_20, %c0_21], %38 {strides = array<i32>} : memref<2x10xf32, #tpu.memory_space<vmem>>, vector<2x10xf32>,
    } else {
    }
    %c0 = arith.constant 0 : index
    %c0_1 = arith.constant 0 : index
    %3 = vector.load %arg3[%c0, %c0_1] : memref<2x32xbf16, #tpu.memory_space<vmem>>, vector<2x32xbf16>
    %4 = arith.extf %3 : vector<2x32xbf16> to vector<2x32xf32>
    %cst = arith.constant dense<0.000000e+00> : vector<2xf32>
    %5 = vector.multi_reduction <add>, %4, %cst [1] : vector<2x32xf32> to vector<2xf32>
    %6 = vector.shape_cast %5 : vector<2xf32> to vector<2x1xf32>
    %cst_2 = arith.constant 3.200000e+01 : f32
    %7 = vector.broadcast %cst_2 : f32 to vector<2x1xf32>
    %8 = arith.divf %6, %7 : vector<2x1xf32>
    %9 = vector.broadcast %8 : vector<2x1xf32> to vector<2x32xf32>
    %10 = arith.subf %4, %9 : vector<2x32xf32>
    %11 = arith.mulf %10, %10 : vector<2x32xf32>
    %cst_3 = arith.constant dense<0.000000e+00> : vector<2xf32>
    %12 = vector.multi_reduction <add>, %11, %cst_3 [1] : vector<2x32xf32> to vector<2xf32>
    %13 = vector.shape_cast %12 : vector<2xf32> to vector<2x1xf32>
    %cst_4 = arith.constant 3.200000e+01 : f32
    %14 = vector.broadcast %cst_4 : f32 to vector<2x1xf32>
    %15 = arith.divf %13, %14 : vector<2x1xf32>
    %16 = vector.broadcast %8 : vector<2x1xf32> to vector<2x32xf32>
    %17 = arith.subf %4, %16 : vector<2x32xf32>
    %cst_5 = arith.constant 9.99999974E-6 : f32
    %18 = vector.broadcast %cst_5 : f32 to vector<2x1xf32>
    %19 = arith.addf %15, %18 : vector<2x1xf32>
    %20 = math.rsqrt %19 : vector<2x1xf32>
    %21 = vector.broadcast %20 : vector<2x1xf32> to vector<2x32xf32>
    %22 = arith.mulf %17, %21 : vector<2x32xf32>
    %c0_6 = arith.constant 0 : index
    %c0_7 = arith.constant 0 : index
    %23 = vector.load %arg6[%c0_6, %c0_7] : memref<1x32xf32, #tpu.memory_space<vmem>>, vector<1x32xf32>
    %24 = vector.broadcast %23 : vector<1x32xf32> to vector<2x32xf32>
    %25 = arith.mulf %22, %24 : vector<2x32xf32>
    %c0_8 = arith.constant 0 : index
    %c0_9 = arith.constant 0 : index
    %26 = vector.load %arg7[%c0_8, %c0_9] : memref<1x32xf32, #tpu.memory_space<vmem>>, vector<1x32xf32>
    %27 = vector.broadcast %26 : vector<1x32xf32> to vector<2x32xf32>
    %28 = arith.addf %25, %27 : vector<2x32xf32>
    %29 = arith.truncf %28 : vector<2x32xf32> to vector<2x32xbf16>
    %c0_10 = arith.constant 0 : index
    %c0_11 = arith.constant 0 : index
    %30 = vector.load %arg9[%c0_10, %c0_11] : memref<2x10xf32, #tpu.memory_space<vmem>>, vector<2x10xf32>
    %c0_12 = arith.constant 0 : index
    %c0_13 = arith.constant 0 : index
    %31 = vector.load %arg4[%c0_12, %c0_13] : memref<32x10xbf16, #tpu.memory_space<vmem>>, vector<32x10xbf16>
    %cst_14 = arith.constant dense<0.000000e+00> : vector<2x10xf32>
    %32 = tpu.matmul %29, %31, %cst_14 {dimension_numbers = #tpu.dot_dimension_numbers<[1], [0], [0], [1], [0, 0, 1, 1], [], []>} : vector<2x32xbf16>, vector<32x10xbf16>, vector<2x10xf32> -> vector<2x10xf32>
    %33 = arith.addf %30, %32 : vector<2x10xf32>
    %c0_15 = arith.constant 0 : index
    %c0_16 = arith.constant 0 : index
    %34 = vector.load %arg9[%c0_15, %c0_16] : memref<2x10xf32, #tpu.memory_space<vmem>>, vector<2x10xf32>
    tpu.vector_store %arg9[%c0_15, %c0_16], %33 {strides = array<i32>} : memref<2x10xf32, #tpu.memory_space<vmem>>, vector<2x10xf32>,
    %c0_i32_17 = arith.constant 0 : i32
    %35 = arith.cmpi eq, %arg2, %c0_i32_17 : i32
    %36 = arith.extui %35 : i1 to i32
    %c0_i32_18 = arith.constant 0 : i32
    %37 = arith.cmpi ne, %36, %c0_i32_18 : i32
    scf.if %37 {
      %c0_19 = arith.constant 0 : index
      %c0_20 = arith.constant 0 : index
      %38 = vector.load %arg9[%c0_19, %c0_20] : memref<2x10xf32, #tpu.memory_space<vmem>>, vector<2x10xf32>
      %c0_21 = arith.constant 0 : index
      %c0_22 = arith.constant 0 : index
      %39 = vector.load %arg5[%c0_21, %c0_22] : memref<1x10xf32, #tpu.memory_space<vmem>>, vector<1x10xf32>
      %40 = vector.broadcast %39 : vector<1x10xf32> to vector<2x10xf32>
      %41 = arith.addf %38, %40 : vector<2x10xf32>
      %c0_23 = arith.constant 0 : index
      %c0_24 = arith.constant 0 : index
      %42 = vector.load %arg8[%c0_23, %c0_24] : memref<2x10xf32, #tpu.memory_space<vmem>>, vector<2x10xf32>
      tpu.vector_store %arg8[%c0_23, %c0_24], %41 {strides = array<i32>} : memref<2x10xf32, #tpu.memory_space<vmem>>, vector<2x10xf32>,
    } else {
    }
    return
  }
  func.func @transform_0(%arg0: i32, %arg1: i32, %arg2: i32) -> (i32, i32) {
    %c0_i32 = arith.constant 0 : i32
    return %arg0, %arg2 : i32, i32
  }
  func.func @transform_1(%arg0: i32, %arg1: i32, %arg2: i32) -> (i32, i32) {
    %c0_i32 = arith.constant 0 : i32
    return %arg2, %arg1 : i32, i32
  }
  func.func @transform_2(%arg0: i32, %arg1: i32, %arg2: i32) -> (i32, i32) {
    %c0_i32 = arith.constant 0 : i32
    %c0_i32_0 = arith.constant 0 : i32
    return %c0_i32, %arg1 : i32, i32
  }
  func.func @transform_3(%arg0: i32, %arg1: i32, %arg2: i32) -> (i32, i32) {
    %c0_i32 = arith.constant 0 : i32
    %c0_i32_0 = arith.constant 0 : i32
    %c0_i32_1 = arith.constant 0 : i32
    return %c0_i32, %c0_i32_0 : i32, i32
  }
  func.func @transform_4(%arg0: i32, %arg1: i32, %arg2: i32) -> (i32, i32) {
    %c0_i32 = arith.constant 0 : i32
    %c0_i32_0 = arith.constant 0 : i32
    %c0_i32_1 = arith.constant 0 : i32
    return %c0_i32, %c0_i32_0 : i32, i32
  }
  func.func @transform_5(%arg0: i32, %arg1: i32, %arg2: i32) -> (i32, i32) {
    %c0_i32 = arith.constant 0 : i32
    return %arg0, %arg1 : i32, i32
  }
}

</mosaic_0001>

<bundles_post_ra>
// kernel: vit_forward.14
= control target key start
LH: loop header
LB: loop body
LE: loop exit
PB: predicated region body
PF: predicated region fallthrough
CT: control target
= control target key end

     0   :  { %s827_s6 = smov 0   ;;  %s989_s0 = inlined_call_operand.vmem [shape: bf16[2,17,96], index: 0, kind: input, shape index: {}]   ;;  %s990_s1 = inlined_call_operand.vmem [shape: bf16[2,17,32], index: 1, kind: output, shape index: {}]  }
   0x1 LB: > { %s677_s7 = sadd.s32 4294967295, %s800_s6   ;;  %p681_p0 = scmp.ge.s32.totalorder %s800_s6, 1  ;;  %s800_s6 = sphi %s827_s6, %s11_s6  }
   0x2   : > { %p87_p1 = scmp.lt.s32.totalorder %s800_s6, 3 }
   0x4   : > { %p88_p2 = pnand %p681_p0, %p87_p1 }
   0x5   : > { %p107_p3 = scmp.lt.s32.totalorder (!%p88_p2), %s677_s7, 1  ;;  %s802_s12 = smov (!%p88_p2), 96  }
   0x6   : > { %91 = sbr.rel (%p88_p2) target bundleno = 1392 (0x570), region = 24  ;;  %s803_s13 = smov (!%p88_p2), 88  }
   0x7   : > { %s804_s14 = smov (!%p88_p2), 120   ;;  %s805_s15 = smov (!%p88_p2), 64  }
   0x8   : > { %s806_s16 = smov (!%p88_p2), 80   ;;  %s807_s17 = smov (!%p88_p2), 72  }
   0x9   : > { %s809_s18 = smov (!%p88_p2), 104   ;;  %s810_s19 = smov (!%p88_p2), 112  }
   0xa   : > { %s811_s20 = smov (!%p88_p2), 56   ;;  %s812_s21 = smov (!%p88_p2), 48  }
   0xb   : > { %s992_s7 = smov (!%p107_p3, %s677_s7), 1  ;;  %vm133_vm0 = vcmask 64512   ;;  %vm167_vm1 = vcmask 138240   ;;  %vm174_vm2 = vcmask 131072   ;;  %vm215_vm3 = vcmask 1040384   ;;  %s813_s22 = smov 40  }
   0xc   : > { %s707_s8 = smul.u32 12, %s992_s7  ;;  %v808_v39 = vmov 0   ;;  %s814_s23 = smov 8   ;;  %vm602_vm4 = vcmask 130048   ;;  %vm606_vm5 = vcmask 195584   ;;  %vm613_vm6 = vcmask 257024  }
   0xd   : > { %v873_v40 = vsel %vm215_vm3, 65535, %v808_v39  ;;  %s815_s24 = smov 24   ;;  %s816_s25 = smov 16   ;;  %vm616_vm7 = vcmask 253952   ;;  %vm617_vm8 = vsmask.f32 256 }
   0xe   : > { %s111_s11 = scalar_lea.vmem %s989_s0, %s707_s8  ;;  %s116_s28 = scalar_lea.vmem %s990_s1, %s707_s8  ;;  %vm618_vm9 = vmand %vm616_vm7, %vm617_vm8 }
   0xf   : > { %v120_v0 = vld [vmem:[%s111_s11 + $0x8] sm:$0x1]  ;;  %v846_v3 = vld [vmem:[%s111_s11] sm:$0xff] }
  0x10   : > { %v126_v1 = vunpack.c.l.b16 %v120_v0 }
  0x12   : > { %v843_v2 = vpack.c.b16 %v126_v1, %v126_v1 }
  0x14   : > { %131 = vrot.lane.b32.xlu0 %v843_v2, %s802_s12  ;;  %245 = vrot.lane.b32.xlu2 %v843_v2, %s803_s13 }
  0x1c   : > { %129 = vrot.lane.b32.xlu0 %v846_v3, %s802_s12  ;;  %239 = vrot.lane.b32.xlu2 %v846_v3, %s804_s14 }
  0x24   : > { %243 = vrot.lane.b32.xlu0 %v846_v3, %s803_s13 }
  0x6e   : > { %v246_v8 = vpop.permute.xlu2 %245 }
  0x6f   : > { %v257_v9 = vsel %vm133_vm0, %v246_v8, 0 }
  0x70   : > { %265 = vmatpush.bf16.xpose.msra.mxu2 %v257_v9 }
  0x76   : > { %v240_v14 = vpop.permute.xlu2 %239 }
  0x86   : > { %v132_v4 = vpop.permute.xlu0 %131 }
  0x87   : > { %v144_v5 = vsel %vm133_vm0, %v132_v4, 0 }
  0x88   : > { %152 = vmatpush.bf16.xpose.msra.mxu0 %v144_v5 }
  0x8e   : > { %v130_v6 = vpop.permute.xlu0 %129 }
  0x8f   : > { %v141_v7 = vsel %vm133_vm0, %v130_v6, 0 }
  0x90   : > { %153 = vmatpush.bf16.xpose.msra.mxu0 %v141_v7 }
  0x96   : > { %v244_v10 = vpop.permute.xlu0 %243 }
  0x97   : > { %688 = vmatmul.msk.bf16.vlgmr.msra.gmra.mxu0 %vm133_vm0, %v846_v3  ;;  %v254_v11 = vsel %vm133_vm0, %v244_v10, 0 }
  0x98   : > { %266 = vmatpush.bf16.xpose.msra.mxu2 %v254_v11 }
  0x9f   : > { %692 = vmatmul.msk.bf16.vlgmr.msra.gmra.mxu2 %vm133_vm0, %v240_v14 }
  0xa7   : > { %689 = vmatmul.msk.bf16.gmra.mxu0 %vm133_vm0, %v843_v2 }
 0x114   : > { %v155_v12 = vpop.f32.mrf.mxu0 }
 0x115   : > { %v164_v13 = vmul.f32 0.35355338, %v155_v12 }
 0x117   : > { %v168_v15 = vsel %vm167_vm1, %v164_v13, -inf }
 0x118   : > { %169 = vmax.xlane.f32.xlu1 %v168_v15 }
 0x11c   : > { %v157_v16 = vpop.f32.mrf.mxu0 }
 0x11d   : > { %v165_v17 = vmul.f32 0.35355338, %v157_v16 }
 0x11f   : > { %v171_v18 = vsel %vm167_vm1, %v165_v17, -inf }
 0x120   : > { %172 = vmax.xlane.f32.xlu1 %v171_v18 }
 0x122   : > { %v268_v42 = vpop.f32.mrf.mxu2 }
 0x123   : > { %v883_v43 = vmul.f32 0.35355338, %v268_v42 }
 0x124   : > { %v160_v19 = vpop.f32.mrf.mxu0 }
 0x125   : > { %v166_v20 = vmul.f32 0.35355338, %v160_v19  ;;  %v280_v44 = vsel %vm167_vm1, %v883_v43, -inf }
 0x127   : > { %v175_v21 = vsel %vm174_vm2, %v166_v20, -inf }
 0x128   : > { %176 = vmax.xlane.f32.xlu2 %v175_v21 }
 0x12a   : > { %v270_v46 = vpop.f32.mrf.mxu2 }
 0x12b   : > { %v278_v47 = vmul.f32 0.35355338, %v270_v46 }
 0x12c   : > { %v162_v22 = vpop.f32.mrf.mxu0 }
 0x12d   : > { %v283_v48 = vsel %vm167_vm1, %v278_v47, -inf }
 0x139   : > { %206 = vrot.lane.b32.xlu1 %v843_v2, %s805_s15 }
 0x140   : > { %204 = vrot.lane.b32.xlu2 %v846_v3, %s805_s15 }
 0x18b   : > { %v170_v23 = vpop.xlane.xlu1 %169 }
 0x18c   : > { %v178_v24 = vsub.f32 %v164_v13, %v170_v23 }
 0x18e   : > { %v181_v25 = vmul.f32 1.442695, %v178_v24 }
 0x190   : > { %746 = vpow2.f32 %v181_v25 }
 0x193   : > { %v173_v26 = vpop.xlane.xlu1 %172 }
 0x194   : > { %v179_v27 = vsub.f32 %v165_v17, %v173_v26 }
 0x196   : > { %v747_v28 = vpop.eup %746  ;;  %v183_v29 = vmul.f32 1.442695, %v179_v27 }
 0x197   : > { %v187_v30 = vsel %vm167_vm1, %v747_v28, 0.0 }
 0x198   : > { %748 = vpow2.f32 %v183_v29  ;;  %188 = vadd.xlane.f32.xlu1 %v187_v30 }
 0x19b   : > { %v177_v31 = vpop.xlane.xlu2 %176 }
 0x19c   : > { %v180_v32 = vsub.f32 %v166_v20, %v177_v31 }
 0x19e   : > { %v749_v33 = vpop.eup %748  ;;  %v185_v34 = vmul.f32 1.442695, %v180_v32 }
 0x19f   : > { %v190_v35 = vsel %vm167_vm1, %v749_v33, 0.0 }
 0x1a0   : > { %750 = vpow2.f32 %v185_v34  ;;  %191 = vadd.xlane.f32.xlu0 %v190_v35 }
 0x1a3   : > { %v205_v45 = vpop.permute.xlu2 %204 }
 0x1a6   : > { %v751_v36 = vpop.eup %750 }
 0x1a7   : > { %v193_v37 = vsel %vm174_vm2, %v751_v36, 0.0 }
 0x1a8   : > { %194 = vadd.xlane.f32.xlu2 %v193_v37 }
 0x1ab   : > { %v207_v38 = vpop.permute.xlu1 %206 }
 0x1ac   : > { %v219_v41 = vand.u32 %v873_v40, %v207_v38 }
 0x1ae   : > { %227 = vmatpush.bf16.msra.mxu1 %v219_v41 }
 0x1b1   : > { %353 = vrot.lane.b32.xlu1 %v843_v2, %s806_s16 }
 0x1b2   : > { %228 = vmatpush.bf16.msra.mxu1 %v205_v45 }
 0x1b4   : > { %351 = vrot.lane.b32.xlu0 %v846_v3, %s806_s16 }
 0x1b9   : > { %461 = vrot.lane.b32.xlu1 %v843_v2, %s807_s17 }
 0x1bc   : > { %455 = vrot.lane.b32.xlu0 %v846_v3, %s809_s18 }
 0x1c0   : > { %457 = vrot.lane.b32.xlu2 %v843_v2, %s809_s18 }
 0x1c1   : > { %241 = vrot.lane.b32.xlu1 %v843_v2, %s804_s14 }
 0x1c9   : > { %459 = vrot.lane.b32.xlu1 %v846_v3, %s807_s17 }
 0x1d1   : > { %347 = vrot.lane.b32.xlu1 %v846_v3, %s810_s19 }
 0x1d9   : > { %349 = vrot.lane.b32.xlu1 %v843_v2, %s810_s19 }
 0x1e6   : > { %281 = vmax.xlane.f32.xlu0 %v280_v44 }
 0x203   : > { %284 = vmax.xlane.f32.xlu1 %v283_v48 }
 0x20b   : > { %v189_v49 = vpop.xlane.xlu1 %188 }
 0x20c   : > { %752 = vrcp.f32 %v189_v49 }
 0x212   : > { %v753_v51 = vpop.eup %752 }
 0x213   : > { %v192_v50 = vpop.xlane.xlu0 %191  ;;  %v199_v53 = vmul.f32 %v753_v51, %v747_v28 }
 0x214   : > { %754 = vrcp.f32 %v192_v50 }
 0x21a   : > { %v755_v52 = vpop.eup %754 }
 0x21b   : > { %v200_v54 = vmul.f32 %v755_v52, %v749_v33  ;;  %v195_v55 = vpop.xlane.xlu2 %194 }
 0x21c   : > { %756 = vrcp.f32 %v195_v55 }
 0x21d   : > { %v202_v56 = vpack.c.bf16 %v200_v54, %v199_v53 }
 0x21f   : > { %690 = vmatmul.msk.bf16.vlgmr.msra.gmra.mxu1 %vm167_vm1, %v202_v56 }
 0x222   : > { %v757_v59 = vpop.eup %756 }
 0x223   : > { %v354_v57 = vpop.permute.xlu1 %353  ;;  %v201_v60 = vmul.f32 %v757_v59, %v751_v36  ;;  %v458_v9 = vpop.permute.xlu2 %457 }
 0x224   : > { %v365_v58 = vsel %vm133_vm0, %v354_v57, 0 }
 0x225   : > { %373 = vmatpush.bf16.xpose.msrb.mxu1 %v365_v58  ;;  %v203_v1 = vpack.c.bf16 %v201_v60, %v201_v60 }
 0x226   : > { %v352_v61 = vpop.permute.xlu0 %351 }
 0x227   : > { %v362_v62 = vsel %vm133_vm0, %v352_v61, 0 }
 0x22b   : > { %v462_v63 = vpop.permute.xlu1 %461 }
 0x22c   : > { %v473_v0 = vsel %vm133_vm0, %v462_v63, 0 }
 0x22d   : > { %481 = vmatpush.bf16.xpose.msrb.mxu0 %v473_v0  ;;  %374 = vmatpush.bf16.xpose.msrb.mxu1 %v362_v62 }
 0x22e   : > { %v456_v7 = vpop.permute.xlu0 %455 }
 0x22f   : > { %691 = vmatmul.msk.bf16.gmra.mxu1 %vm167_vm1, %v203_v1 }
 0x233   : > { %v242_v4 = vpop.permute.xlu1 %241 }
 0x234   : > { %693 = vmatmul.msk.bf16.gmra.mxu2 %vm133_vm0, %v242_v4 }
 0x23b   : > { %v460_v5 = vpop.permute.xlu1 %459 }
 0x23c   : > { %v470_v6 = vsel %vm133_vm0, %v460_v5, 0 }
 0x23d   : > { %482 = vmatpush.bf16.xpose.msrb.mxu0 %v470_v6 }
 0x243   : > { %v348_v8 = vpop.permute.xlu1 %347 }
 0x244   : > { %700 = vmatmul.msk.bf16.vlgmr.msrb.gmra.mxu0 %vm133_vm0, %v456_v7  ;;  %696 = vmatmul.msk.bf16.vlgmr.msrb.gmra.mxu1 %vm133_vm0, %v348_v8 }
 0x24b   : > { %v350_v10 = vpop.permute.xlu1 %349 }
 0x254   : > { %701 = vmatmul.msk.bf16.gmra.mxu0 %vm133_vm0, %v458_v9  ;;  %697 = vmatmul.msk.bf16.gmra.mxu1 %vm133_vm0, %v350_v10 }
 0x259   : > { %v282_v22 = vpop.xlane.xlu0 %281 }
 0x25a   : > { %v289_v25 = vsub.f32 %v883_v43, %v282_v22 }
 0x25c   : > { %v292_v27 = vmul.f32 1.442695, %v289_v25 }
 0x276   : > { %v285_v16 = vpop.xlane.xlu1 %284 }
 0x277   : > { %v290_v19 = vsub.f32 %v278_v47, %v285_v16 }
 0x279   : > { %v294_v20 = vmul.f32 1.442695, %v290_v19 }
 0x27b   : > { %758 = vpow2.f32 %v294_v20 }
 0x27c   : > { %760 = vpow2.f32 %v292_v27 }
 0x281   : > { %v908_v28 = vpop.eup %758 }
 0x282   : > { %v301_v32 = vsel %vm167_vm1, %v908_v28, 0.0  ;;  %v761_v36 = vpop.eup %760 }
 0x283   : > { %v298_v42 = vsel %vm167_vm1, %v761_v36, 0.0 }
 0x29c   : > { %v899_v11 = vpop.f32.mrf.mxu1 }
 0x2a4   : > { %v901_v12 = vpop.f32.mrf.mxu1 }
 0x2ac   : > { %v903_v13 = vpop.f32.mrf.mxu1 }
 0x2b4   : > { %v237_v14 = vpop.f32.mrf.mxu1 }
 0x2b7   : > { %v273_v15 = vpop.f32.mrf.mxu2 }
 0x2b8   : > { %v279_v17 = vmul.f32 0.35355338, %v273_v15 }
 0x2ba   : > { %v286_v18 = vsel %vm174_vm2, %v279_v17, -inf }
 0x2bb   : > { %287 = vmax.xlane.f32.xlu2 %v286_v18 }
 0x2bf   : > { %v275_v21 = vpop.f32.mrf.mxu2 }
 0x2c1   : > { %v484_v23 = vpop.f32.mrf.mxu0  ;;  %v376_v31 = vpop.f32.mrf.mxu1 }
 0x2c2   : > { %v493_v24 = vmul.f32 0.35355338, %v484_v23  ;;  %v913_v34 = vmul.f32 0.35355338, %v376_v31 }
 0x2c4   : > { %v496_v26 = vsel %vm167_vm1, %v493_v24, -inf  ;;  %v388_v38 = vsel %vm167_vm1, %v913_v34, -inf }
 0x2c5   : > { %497 = vmax.xlane.f32.xlu0 %v496_v26 }
 0x2c9   : > { %v486_v29 = vpop.f32.mrf.mxu0  ;;  %v378_v41 = vpop.f32.mrf.mxu1 }
 0x2ca   : > { %v494_v30 = vmul.f32 0.35355338, %v486_v29  ;;  %v919_v43 = vmul.f32 0.35355338, %v378_v41 }
 0x2cc   : > { %v499_v33 = vsel %vm167_vm1, %v494_v30, -inf  ;;  %v391_v45 = vsel %vm167_vm1, %v919_v43, -inf }
 0x2cd   : > { %302 = vadd.xlane.f32.xlu0 %v301_v32  ;;  %500 = vmax.xlane.f32.xlu1 %v499_v33 }
 0x2d1   : > { %v489_v35 = vpop.f32.mrf.mxu0  ;;  %v381_v61 = vpop.f32.mrf.mxu1 }
 0x2d2   : > { %v495_v37 = vmul.f32 0.35355338, %v489_v35  ;;  %v387_v22 = vmul.f32 0.35355338, %v381_v61 }
 0x2d4   : > { %v502_v39 = vsel %vm174_vm2, %v495_v37, -inf }
 0x2d5   : > { %389 = vmax.xlane.f32.xlu0 %v388_v38  ;;  %503 = vmax.xlane.f32.xlu2 %v502_v39 }
 0x2d6   : > { %299 = vadd.xlane.f32.xlu1 %v298_v42 }
 0x2d9   : > { %v491_v44 = vpop.f32.mrf.mxu0  ;;  %v383_v5 = vpop.f32.mrf.mxu1 }
 0x2de   : > { %392 = vmax.xlane.f32.xlu1 %v391_v45 }
 0x2ed   : > { %317 = vrot.lane.b32.xlu2 %v843_v2, %s811_s20 }
 0x2f7   : > { %315 = vrot.lane.b32.xlu1 %v846_v3, %s811_s20 }
 0x32e   : > { %v288_v46 = vpop.xlane.xlu2 %287 }
 0x32f   : > { %v291_v47 = vsub.f32 %v279_v17, %v288_v46 }
 0x331   : > { %v296_v48 = vmul.f32 1.442695, %v291_v47 }
 0x333   : > { %762 = vpow2.f32 %v296_v48 }
 0x338   : > { %v498_v49 = vpop.xlane.xlu0 %497 }
 0x339   : > { %v925_v50 = vpop.eup %762  ;;  %v505_v51 = vsub.f32 %v493_v24, %v498_v49  ;;  %v394_v24 = vsel %vm174_vm2, %v387_v22, -inf }
 0x33a   : > { %v304_v52 = vsel %vm174_vm2, %v925_v50, 0.0 }
 0x33b   : > { %v508_v53 = vmul.f32 1.442695, %v505_v51  ;;  %305 = vadd.xlane.f32.xlu0 %v304_v52 }
 0x33d   : > { %764 = vpow2.f32 %v508_v53 }
 0x340   : > { %v501_v54 = vpop.xlane.xlu1 %500  ;;  %v303_v9 = vpop.xlane.xlu0 %302 }
 0x341   : > { %v506_v55 = vsub.f32 %v494_v30, %v501_v54 }
 0x343   : > { %v929_v56 = vpop.eup %764  ;;  %v510_v57 = vmul.f32 1.442695, %v506_v55 }
 0x344   : > { %v514_v58 = vsel %vm167_vm1, %v929_v56, 0.0 }
 0x345   : > { %766 = vpow2.f32 %v510_v57  ;;  %515 = vadd.xlane.f32.xlu2 %v514_v58 }
 0x348   : > { %v504_v59 = vpop.xlane.xlu2 %503  ;;  %v390_v20 = vpop.xlane.xlu0 %389 }
 0x349   : > { %v507_v60 = vsub.f32 %v495_v37, %v504_v59  ;;  %v300_v8 = vpop.xlane.xlu1 %299  ;;  %v397_v21 = vsub.f32 %v913_v34, %v390_v20 }
 0x34b   : > { %v933_v62 = vpop.eup %766  ;;  %v512_v63 = vmul.f32 1.442695, %v507_v60 }
 0x34c   : > { %v517_v0 = vsel %vm167_vm1, %v933_v62, 0.0 }
 0x34d   : > { %768 = vpow2.f32 %v512_v63  ;;  %518 = vadd.xlane.f32.xlu1 %v517_v0 }
 0x34e   : > { %770 = vrcp.f32 %v300_v8 }
 0x34f   : > { %425 = vrot.lane.b32.xlu0 %v843_v2, %s812_s21  ;;  %772 = vrcp.f32 %v303_v9 }
 0x350   : > { %v318_v1 = vpop.permute.xlu2 %317 }
 0x351   : > { %v327_v4 = vand.u32 %v318_v1, %v873_v40  ;;  %v393_v10 = vpop.xlane.xlu1 %392 }
 0x352   : > { %v398_v23 = vsub.f32 %v919_v43, %v393_v10 }
 0x353   : > { %v940_v6 = vpop.eup %768  ;;  %335 = vmatpush.bf16.msra.mxu3 %v327_v4 }
 0x354   : > { %v520_v7 = vsel %vm174_vm2, %v940_v6, 0.0  ;;  %v771_v14 = vpop.eup %770  ;;  %v402_v25 = vmul.f32 1.442695, %v398_v23 }
 0x355   : > { %521 = vadd.xlane.f32.xlu1 %v520_v7  ;;  %v773_v15 = vpop.eup %772  ;;  %v310_v16 = vmul.f32 %v771_v14, %v761_v36 }
 0x356   : > { %v311_v18 = vmul.f32 %v773_v15, %v908_v28 }
 0x357   : > { %533 = vrot.lane.b32.xlu0 %v843_v2, %s813_s22  ;;  %v400_v2 = vmul.f32 1.442695, %v397_v21 }
 0x358   : > { %v313_v19 = vpack.c.bf16 %v311_v18, %v310_v16 }
 0x359   : > { %774 = vpow2.f32 %v400_v2 }
 0x35a   : > { %776 = vpow2.f32 %v402_v25 }
 0x35d   : > { %531 = vrot.lane.b32.xlu2 %v846_v3, %s813_s22 }
 0x35f   : > { %v775_v26 = vpop.eup %774 }
 0x360   : > { %v406_v27 = vsel %vm167_vm1, %v775_v26, 0.0  ;;  %v777_v28 = vpop.eup %776 }
 0x361   : > { %v409_v29 = vsel %vm167_vm1, %v777_v28, 0.0 }
 0x369   : > { %v316_v17 = vpop.permute.xlu1 %315 }
 0x36a   : > { %336 = vmatpush.bf16.msra.mxu3 %v316_v17 }
 0x36d   : > { %694 = vmatmul.msk.bf16.vlgmr.msra.gmra.mxu3 %vm167_vm1, %v313_v19 }
 0x381   : > { %395 = vmax.xlane.f32.xlu0 %v394_v24 }
 0x389   : > { %407 = vadd.xlane.f32.xlu0 %v406_v27 }
 0x391   : > { %410 = vadd.xlane.f32.xlu0 %v409_v29 }
 0x3a5   : > { %423 = vrot.lane.b32.xlu0 %v846_v3, %s812_s21 }
 0x3ae   : > { %v306_v30 = vpop.xlane.xlu0 %305 }
 0x3af   : > { %778 = vrcp.f32 %v306_v30 }
 0x3b5   : > { %v779_v31 = vpop.eup %778 }
 0x3b6   : > { %v312_v32 = vmul.f32 %v779_v31, %v925_v50 }
 0x3b8   : > { %v314_v33 = vpack.c.bf16 %v312_v32, %v312_v32  ;;  %v516_v37 = vpop.xlane.xlu2 %515 }
 0x3ba   : > { %695 = vmatmul.msk.bf16.gmra.mxu3 %vm167_vm1, %v314_v33 }
 0x3c0   : > { %v519_v34 = vpop.xlane.xlu1 %518  ;;  %v532_v43 = vpop.permute.xlu2 %531 }
 0x3c1   : > { %v426_v35 = vpop.permute.xlu0 %425  ;;  %780 = vrcp.f32 %v519_v34 }
 0x3c2   : > { %v435_v36 = vand.u32 %v426_v35, %v873_v40  ;;  %782 = vrcp.f32 %v516_v37 }
 0x3c4   : > { %443 = vmatpush.bf16.msrb.mxu3 %v435_v36 }
 0x3c7   : > { %v781_v39 = vpop.eup %780 }
 0x3c8   : > { %v783_v41 = vpop.eup %782  ;;  %v527_v42 = vmul.f32 %v781_v39, %v933_v62  ;;  %v522_v45 = vpop.xlane.xlu1 %521 }
 0x3c9   : > { %v534_v38 = vpop.permute.xlu0 %533  ;;  %v526_v44 = vmul.f32 %v783_v41, %v929_v56  ;;  %784 = vrcp.f32 %v522_v45 }
 0x3ca   : > { %v543_v3 = vand.u32 %v534_v38, %v873_v40 }
 0x3cb   : > { %v529_v46 = vpack.c.bf16 %v527_v42, %v526_v44 }
 0x3cc   : > { %551 = vmatpush.bf16.msrb.mxu2 %v543_v3  ;;  %v619_v3 = vld [vmem:[%s116_s28 + $0x8] sm:$0x1] }
 0x3cf   : > { %v785_v47 = vpop.eup %784 }
 0x3d0   : > { %552 = vmatpush.bf16.msrb.mxu2 %v532_v43  ;;  %v528_v48 = vmul.f32 %v785_v47, %v940_v6 }
 0x3d2   : > { %v530_v49 = vpack.c.bf16 %v528_v48, %v528_v48 }
 0x3d3   : > { %702 = vmatmul.msk.bf16.vlgmr.msrb.gmra.mxu2 %vm167_vm1, %v529_v46 }
 0x3e3   : > { %703 = vmatmul.msk.bf16.gmra.mxu2 %vm167_vm1, %v530_v49 }
 0x3f0   : > { %v338_v40 = vpop.f32.mrf.mxu3 }
 0x3f4   : > { %v396_v50 = vpop.xlane.xlu0 %395 }
 0x3f5   : > { %v399_v51 = vsub.f32 %v387_v22, %v396_v50 }
 0x3f7   : > { %v404_v52 = vmul.f32 1.442695, %v399_v51 }
 0x3f8   : > { %v340_v53 = vpop.f32.mrf.mxu3 }
 0x3f9   : > { %786 = vpow2.f32 %v404_v52  ;;  %568 = vrot.lane.b32.xlu2 %v340_v53, %s814_s23 }
 0x3fc   : > { %v408_v55 = vpop.xlane.xlu0 %407 }
 0x3ff   : > { %v787_v54 = vpop.eup %786 }
 0x400   : > { %v412_v56 = vsel %vm174_vm2, %v787_v54, 0.0 }
 0x401   : > { %413 = vadd.xlane.f32.xlu0 %v412_v56 }
 0x404   : > { %v411_v57 = vpop.xlane.xlu0 %410 }
 0x405   : > { %788 = vrcp.f32 %v411_v57 }
 0x406   : > { %790 = vrcp.f32 %v408_v55 }
 0x40b   : > { %v789_v58 = vpop.eup %788 }
 0x40c   : > { %v791_v59 = vpop.eup %790  ;;  %v419_v60 = vmul.f32 %v789_v58, %v777_v28 }
 0x40d   : > { %v418_v61 = vmul.f32 %v791_v59, %v775_v26 }
 0x40f   : > { %v421_v63 = vpack.c.bf16 %v419_v60, %v418_v61 }
 0x417   : > { %v424_v62 = vpop.permute.xlu0 %423 }
 0x418   : > { %444 = vmatpush.bf16.msrb.mxu3 %v424_v62 }
 0x41b   : > { %698 = vmatmul.msk.bf16.vlgmr.msrb.gmra.mxu3 %vm167_vm1, %v421_v63 }
 0x43d   : > { %v343_v0 = vpop.f32.mrf.mxu3 }
 0x43e   : > { %v731_v1 = vpack.i.bf16 %v338_v40, %v343_v0 }
 0x440   : > { %732 = vrot.lane.b32.xlu1 %v731_v1, %s814_s23 }
 0x445   : > { %v345_v4 = vpop.f32.mrf.mxu3 }
 0x453   : > { %v569_v22 = vpop.permute.xlu2 %568 }
 0x454   : > { %v600_v23 = vsel %vm133_vm0, %v901_v12, %v569_v22 }
 0x456   : > { %v554_v5 = vpop.f32.mrf.mxu2 }
 0x45e   : > { %v556_v6 = vpop.f32.mrf.mxu2 }
 0x45f   : > { %592 = vrot.lane.b32.xlu0 %v556_v6, %s815_s24 }
 0x466   : > { %v559_v7 = vpop.f32.mrf.mxu2 }
 0x467   : > { %v741_v8 = vpack.i.bf16 %v554_v5, %v559_v7 }
 0x46e   : > { %v561_v9 = vpop.f32.mrf.mxu2 }
 0x474   : > { %v414_v10 = vpop.xlane.xlu0 %413 }
 0x475   : > { %792 = vrcp.f32 %v414_v10 }
 0x47b   : > { %v793_v14 = vpop.eup %792 }
 0x47c   : > { %v420_v15 = vmul.f32 %v793_v14, %v787_v54 }
 0x47e   : > { %v422_v16 = vpack.c.bf16 %v420_v15, %v420_v15 }
 0x480   : > { %699 = vmatmul.msk.bf16.gmra.mxu3 %vm167_vm1, %v422_v16 }
 0x49e   : > { %v446_v17 = vpop.f32.mrf.mxu3 }
 0x4a6   : > { %v448_v18 = vpop.f32.mrf.mxu3 }
 0x4a7   : > { %580 = vrot.lane.b32.xlu1 %v448_v18, %s816_s25 }
 0x4b2   : > { %v733_v2 = vpop.permute.xlu1 %732 }
 0x4b3   : > { %v735_v30 = vunpack.i.h.bf16 %v733_v2  ;;  %v734_v31 = vunpack.i.l.bf16 %v733_v2 }
 0x4b5   : > { %v599_v34 = vsel %vm133_vm0, %v899_v11, %v735_v30  ;;  %v601_v35 = vsel %vm133_vm0, %v903_v13, %v734_v31 }
 0x4d1   : > { %v593_v25 = vpop.permute.xlu0 %592 }
 0x503   : > { %v451_v19 = vpop.f32.mrf.mxu3 }
 0x504   : > { %v736_v20 = vpack.i.bf16 %v446_v17, %v451_v19 }
 0x506   : > { %737 = vrot.lane.b32.xlu2 %v736_v20, %s816_s25 }
 0x50b   : > { %v453_v21 = vpop.f32.mrf.mxu3 }
 0x50e   : > { %742 = vrot.lane.b32.xlu2 %v741_v8, %s815_s24 }
 0x519   : > { %v581_v24 = vpop.permute.xlu1 %580 }
 0x51a   : > { %v604_v26 = vsel %vm602_vm4, %v600_v23, %v581_v24 }
 0x51b   : > { %v608_v27 = vsel %vm606_vm5, %v604_v26, %v593_v25 }
 0x51c   : > { %v611_v28 = vpack.c.bf16 %v608_v27, %v608_v27 }
 0x51e   : > { %615 = vst.msk [vmem:[%s116_s28 + $0x4] sm:$0xf] %vm613_vm6, %v611_v28 }
 0x560   : > { %v738_v29 = vpop.permute.xlu2 %737 }
 0x561   : > { %v740_v32 = vunpack.i.h.bf16 %v738_v29  ;;  %v739_v12 = vunpack.i.l.bf16 %v738_v29 }
 0x563   : > { %v603_v38 = vsel %vm602_vm4, %v599_v34, %v740_v32  ;;  %v605_v39 = vsel %vm602_vm4, %v601_v35, %v739_v12 }
 0x568   : > { %v743_v33 = vpop.permute.xlu2 %742 }
 0x569   : > { %v745_v36 = vunpack.i.h.bf16 %v743_v33  ;;  %v744_v37 = vunpack.i.l.bf16 %v743_v33 }
 0x56b   : > { %v607_v41 = vsel %vm606_vm5, %v603_v38, %v745_v36  ;;  %v609_v42 = vsel %vm606_vm5, %v605_v39, %v744_v37 }
 0x56c   : > { %v610_v43 = vpack.c.bf16 %v607_v41, %v607_v41  ;;  %v612_v44 = vpack.c.bf16 %v609_v42, %v609_v42 }
 0x56e   : > { %614 = vst.msk [vmem:[%s116_s28] sm:$0xf] %vm613_vm6, %v610_v43  ;;  %v620_v11 = vsel %vm618_vm9, %v612_v44, %v619_v3 }
 0x56f   : > { %621 = vst [vmem:[%s116_s28 + $0x8] sm:$0x1] %v620_v11 }
 0x570 PF: > { %s11_s6 = sadd.s32 1, %s800_s6  }
 0x571   : > { %p8_p4 = scmp.ge.s32.totalorder %s11_s6, 4  }
 0x573   :  { %10 = sbr.rel (!%p8_p4) target bundleno = 1 (0x1), region = 54 }

// kernel: vit_forward.15
= control target key start
LH: loop header
LB: loop body
LE: loop exit
PB: predicated region body
PF: predicated region fallthrough
CT: control target
= control target key end

     0   :  { %vm22_vm0 = vcmask 261120   ;;  %v198_v1 = vmov 0.0   ;;  %vm27_vm1 = vcmask 254976   ;;  %vm149_vm2 = vcmask 257024   ;;  %s283_s1 = inlined_call_operand.vmem [shape: bf16[32,32], index: 1, kind: input, shape index: {}]   ;;  %s284_s0 = inlined_call_operand.vmem [shape: bf16[34,32], index: 0, kind: input, shape index: {}]   ;;  %s285_s2 = inlined_call_operand.vmem [shape: f32[1,32], index: 2, kind: input, shape index: {}]   ;;  %s286_s3 = inlined_call_operand.vmem [shape: bf16[34,32], index: 3, kind: input, shape index: {}]   ;;  %s287_s4 = inlined_call_operand.vmem [shape: bf16[34,32], index: 4, kind: output, shape index: {}]  }
   0x1   :  { %v182_v0 = vld [vmem:[%s283_s1 + $0x8] sm:$0xff]  ;;  %23 = vst.msk [vmem:[#allocation2] sm:$0xff] %vm22_vm0, %v198_v1  ;;  %v33_v2 = vld [vmem:[%s284_s0 + $0x10] sm:$0x1]  ;;  %v181_v3 = vld [vmem:[%s283_s1] sm:$0xff]  ;;  %vm154_vm3 = vcmask 253952  }
   0x2   :  { %24 = vst.msk [vmem:[#allocation2 + $0x8] sm:$0xff] %vm22_vm0, %v198_v1  ;;  %84 = vmatpush.bf16.msra.mxu0 %v182_v0  ;;  %192 = vmatpush.bf16.msra.mxu1 %v182_v0  ;;  %v52_v4 = vunpack.c.l.b16 %v33_v2  ;;  %v179_v5 = vld [vmem:[%s284_s0] sm:$0xff]  ;;  %v180_v6 = vld [vmem:[%s284_s0 + $0x8] sm:$0xff]  ;;  %v133_v33 = vld [vmem:[%s286_s3 + $0x10] sm:$0x1] }
   0x3   :  { %25 = vst.msk [vmem:[#allocation2 + $0x10] sm:$0xff] %vm22_vm0, %v198_v1  ;;  %193 = vmatpush.bf16.msra.mxu2 %v182_v0  ;;  %v184_v15 = vld [vmem:[%s286_s3] sm:$0xff]   ;;  %v191_v19 = vld [vmem:[%s286_s3 + $0x8] sm:$0xff]   ;;  %v138_v38 = vunpack.c.l.bf16 %v133_v33 }
   0x4   :  { %26 = vst.msk [vmem:[#allocation2 + $0x18] sm:$0xff] %vm22_vm0, %v198_v1  ;;  %v55_v7 = vpack.c.b16 %v52_v4, %v52_v4  ;;  %v197_v18 = vld [vmem:[%s285_s2] ss:$0 sm:$0xff]  ;;  %v185_v24 = vunpack.c.l.bf16 %v184_v15  ;;  %v189_v28 = vunpack.c.l.bf16 %v191_v19  ;;  %v186_v40 = vunpack.c.h.bf16 %v184_v15 }
   0x5   :  { %28 = vst.msk [vmem:[#allocation2 + $0x20] sm:$0x3] %vm27_vm1, %v198_v1  ;;  %v190_v43 = vunpack.c.h.bf16 %v191_v19 }
   0x6   :  { %85 = vmatpush.bf16.msra.mxu0 %v181_v3  ;;  %194 = vmatpush.bf16.msra.mxu1 %v181_v3 }
   0x7   :  { %195 = vmatpush.bf16.msra.mxu2 %v181_v3 }
   0x8   :  { %v34_v8 = vld [vmem:[#allocation2] sm:$0xff] }
   0x9   :  { %176 = vmatmul.msk.bf16.vlgmr.msra.gmra.mxu0 %vm22_vm0, %v179_v5  ;;  %177 = vmatmul.msk.bf16.vlgmr.msra.gmra.mxu1 %vm22_vm0, %v180_v6  ;;  %v35_v16 = vld [vmem:[#allocation2 + $0x8] sm:$0xff] }
   0xa   :  { %178 = vmatmul.msk.bf16.vlgmr.msra.gmra.mxu2 %vm22_vm0, %v55_v7  ;;  %v36_v9 = vld [vmem:[#allocation2 + $0x10] sm:$0xff] }
   0xb   :  { %v37_v17 = vld [vmem:[#allocation2 + $0x18] sm:$0xff] }
   0xc   :  { %v38_v14 = vld [vmem:[#allocation2 + $0x20] sm:$0x3] }
  0x86   :  { %v87_v10 = vpop.f32.mrf.mxu0  ;;  %v92_v11 = vpop.f32.mrf.mxu1 }
  0x87   :  { %v101_v12 = vadd.f32 %v87_v10, %v34_v8  ;;  %v103_v13 = vadd.f32 %v92_v11, %v36_v9 }
  0x89   :  { %106 = vst.msk [vmem:[#allocation2] sm:$0xff] %vm22_vm0, %v101_v12 }
  0x8a   :  { %108 = vst.msk [vmem:[#allocation2 + $0x10] sm:$0xff] %vm22_vm0, %v103_v13 }
  0x8d   :  { %v97_v20 = vpop.f32.mrf.mxu2 }
  0x8e   :  { %v105_v21 = vadd.f32 %v97_v20, %v38_v14  ;;  %v89_v22 = vpop.f32.mrf.mxu0  ;;  %v94_v23 = vpop.f32.mrf.mxu1 }
  0x8f   :  { %v102_v25 = vadd.f32 %v89_v22, %v35_v16  ;;  %v104_v26 = vadd.f32 %v94_v23, %v37_v17 }
  0x90   :  { %v115_v27 = vld [vmem:[#allocation2] sm:$0xff]  ;;  %111 = vst.msk [vmem:[#allocation2 + $0x20] sm:$0x3] %vm27_vm1, %v105_v21 }
  0x91   :  { %v124_v29 = vadd.f32 %v197_v18, %v115_v27  ;;  %v117_v30 = vld [vmem:[#allocation2 + $0x10] sm:$0xff]  ;;  %107 = vst.msk [vmem:[#allocation2 + $0x8] sm:$0xff] %vm22_vm0, %v102_v25 }
  0x92   :  { %v126_v31 = vadd.f32 %v197_v18, %v117_v30  ;;  %109 = vst.msk [vmem:[#allocation2 + $0x18] sm:$0xff] %vm22_vm0, %v104_v26 }
  0x93   :  { %v139_v32 = vadd.f32 %v185_v24, %v124_v29 }
  0x94   :  { %v141_v34 = vadd.f32 %v189_v28, %v126_v31 }
  0x95   :  { %v144_v35 = vpack.c.bf16 %v139_v32, %v139_v32  ;;  %v99_v36 = vpop.f32.mrf.mxu2 }
  0x96   :  { %v146_v37 = vpack.c.bf16 %v141_v34, %v141_v34 }
  0x97   :  { %150 = vst.msk [vmem:[%s287_s4] sm:$0xf] %vm149_vm2, %v144_v35  ;;  %v119_v39 = vld [vmem:[#allocation2 + $0x20] sm:$0x3] }
  0x98   :  { %152 = vst.msk [vmem:[%s287_s4 + $0x8] sm:$0xf] %vm149_vm2, %v146_v37  ;;  %v128_v41 = vadd.f32 %v197_v18, %v119_v39  ;;  %v116_v42 = vld [vmem:[#allocation2 + $0x8] sm:$0xff] }
  0x99   :  { %v125_v44 = vadd.f32 %v197_v18, %v116_v42  ;;  %v118_v45 = vld [vmem:[#allocation2 + $0x18] sm:$0xff] }
  0x9a   :  { %v143_v46 = vadd.f32 %v138_v38, %v128_v41  ;;  %v127_v47 = vadd.f32 %v197_v18, %v118_v45 }
  0x9b   :  { %v140_v48 = vadd.f32 %v186_v40, %v125_v44 }
  0x9c   :  { %v148_v49 = vpack.c.bf16 %v143_v46, %v143_v46  ;;  %v142_v50 = vadd.f32 %v190_v43, %v127_v47 }
  0x9d   :  { %v145_v51 = vpack.c.bf16 %v140_v48, %v140_v48 }
  0x9e   :  { %155 = vst.msk [vmem:[%s287_s4 + $0x10] sm:$0x1] %vm154_vm3, %v148_v49  ;;  %v147_v52 = vpack.c.bf16 %v142_v50, %v142_v50 }
  0x9f   :  { %151 = vst.msk [vmem:[%s287_s4 + $0x4] sm:$0xf] %vm149_vm2, %v145_v51 }
  0xa0   :  { %153 = vst.msk [vmem:[%s287_s4 + $0xc] sm:$0xf] %vm149_vm2, %v147_v52 }

// kernel: vit_forward.13
= control target key start
LH: loop header
LB: loop body
LE: loop exit
PB: predicated region body
PF: predicated region fallthrough
CT: control target
= control target key end

     0   :  { %vm42_vm0 = vcmask 261120   ;;  %vm55_vm1 = vcmask 254976   ;;  %v323_v13 = vmov 32.0   ;;  %vm25_vm3 = vcmask 785408   ;;  %s463_s0 = inlined_call_operand.vmem [shape: bf16[34,32], index: 0, kind: input, shape index: {}]   ;;  %s464_s3 = inlined_call_operand.vmem [shape: f32[1,32], index: 3, kind: input, shape index: {}]   ;;  %s465_s4 = inlined_call_operand.vmem [shape: f32[1,32], index: 4, kind: input, shape index: {}]   ;;  %s466_s2 = inlined_call_operand.vmem [shape: f32[1,96], index: 2, kind: input, shape index: {}]   ;;  %s467_s1 = inlined_call_operand.vmem [shape: bf16[32,96], index: 1, kind: input, shape index: {}]   ;;  %s468_s5 = inlined_call_operand.vmem [shape: bf16[34,96], index: 5, kind: output, shape index: {}]  }
   0x1   :  { %v301_v0 = vld [vmem:[%s463_s0 + $0x8] sm:$0xff]   ;;  %v294_v1 = vld [vmem:[%s463_s0] sm:$0xff]   ;;  %v36_v2 = vld [vmem:[%s463_s0 + $0x10] sm:$0x1]  ;;  %311 = vrcp.f32 %v323_v13 }
   0x2   :  { %v299_v3 = vunpack.c.l.bf16 %v301_v0  ;;  %v295_v4 = vunpack.c.l.bf16 %v294_v1  ;;  %v41_v5 = vunpack.c.l.bf16 %v36_v2  ;;  %v300_v9 = vunpack.c.h.bf16 %v301_v0  ;;  %v292_v45 = vld [vmem:[%s467_s1 + $0x8] sm:$0xff]  ;;  %v291_v52 = vld [vmem:[%s467_s1] sm:$0xff] }
   0x3   :  { %v296_v10 = vunpack.c.h.bf16 %v294_v1  ;;  %218 = vmatpush.bf16.msra.mxu0 %v292_v45  ;;  %302 = vmatpush.bf16.msra.mxu1 %v292_v45 }
   0x4   :  { %v49_v6 = vsel %vm42_vm0, %v299_v3, 0.0  ;;  %v43_v7 = vsel %vm42_vm0, %v295_v4, 0.0  ;;  %v56_v8 = vsel %vm55_vm1, %v41_v5, 0.0  ;;  %v52_v11 = vsel %vm42_vm0, %v300_v9, 0.0  ;;  %303 = vmatpush.bf16.msra.mxu2 %v292_v45 }
   0x5   :  { %50 = vadd.xlane.f32.xlu1 %v49_v6  ;;  %44 = vadd.xlane.f32.xlu0 %v43_v7  ;;  %v46_v12 = vsel %vm42_vm0, %v296_v10, 0.0 }
   0x6   :  { %57 = vadd.xlane.f32.xlu2 %v56_v8 }
   0x7   :  { %v312_v14 = vpop.eup %311  ;;  %219 = vmatpush.bf16.msra.mxu0 %v291_v52  ;;  %304 = vmatpush.bf16.msra.mxu1 %v291_v52 }
   0x8   :  { %v60_v15 = vmul.f32 32.0, %v312_v14  ;;  %vm64_vm2 = vweird.f32 %v312_v14  ;;  %305 = vmatpush.bf16.msra.mxu2 %v291_v52 }
   0xa   :  { %v61_v16 = vsub.f32 1.0, %v60_v15 }
   0xc   :  { %v62_v17 = vmul.f32 %v312_v14, %v61_v16 }
   0xd   :  { %53 = vadd.xlane.f32.xlu1 %v52_v11  ;;  %47 = vadd.xlane.f32.xlu0 %v46_v12 }
   0xe   :  { %v63_v18 = vadd.f32 %v312_v14, %v62_v17 }
  0x10   :  { %v369_v19 = vsel %vm64_vm2, %v312_v14, %v63_v18 }
  0x78   :  { %v51_v20 = vpop.xlane.xlu1 %50  ;;  %v45_v21 = vpop.xlane.xlu0 %44 }
  0x79   :  { %v68_v22 = vmul.f32 %v369_v19, %v51_v20  ;;  %v66_v23 = vmul.f32 %v369_v19, %v45_v21  ;;  %v58_v28 = vpop.xlane.xlu2 %57 }
  0x7a   :  { %v70_v35 = vmul.f32 %v369_v19, %v58_v28 }
  0x7b   :  { %v373_v24 = vsub.f32 %v299_v3, %v68_v22  ;;  %v375_v25 = vsub.f32 %v295_v4, %v66_v23  ;;  %v324_v3 = vmov 0.0  }
  0x7c   :  { %v390_v38 = vsub.f32 %v41_v5, %v70_v35  ;;  %26 = vst.msk [vmem:[#allocation2] sm:$0xff] %vm25_vm3, %v324_v3 }
  0x7d   :  { %v78_v26 = vmul.f32 %v373_v24, %v373_v24  ;;  %v76_v27 = vmul.f32 %v375_v25, %v375_v25  ;;  %27 = vst.msk [vmem:[#allocation2 + $0x8] sm:$0xff] %vm25_vm3, %v324_v3 }
  0x7e   :  { %v80_v43 = vmul.f32 %v390_v38, %v390_v38  ;;  %28 = vst.msk [vmem:[#allocation2 + $0x10] sm:$0xff] %vm25_vm3, %v324_v3 }
  0x7f   :  { %v87_v29 = vsel %vm42_vm0, %v78_v26, 0.0  ;;  %v81_v30 = vsel %vm42_vm0, %v76_v27, 0.0  ;;  %29 = vst.msk [vmem:[#allocation2 + $0x18] sm:$0xff] %vm25_vm3, %v324_v3  ;;  %v308_v27 = vld [vmem:[%s464_s3] ss:$0 sm:$0xff] }
  0x80   :  { %88 = vadd.xlane.f32.xlu1 %v87_v29  ;;  %v54_v31 = vpop.xlane.xlu1 %53  ;;  %82 = vadd.xlane.f32.xlu2 %v81_v30  ;;  %v48_v32 = vpop.xlane.xlu0 %47  ;;  %v93_v44 = vsel %vm55_vm1, %v80_v43, 0.0 }
  0x81   :  { %v69_v33 = vmul.f32 %v369_v19, %v54_v31  ;;  %v67_v34 = vmul.f32 %v369_v19, %v48_v32 }
  0x83   :  { %v386_v36 = vsub.f32 %v300_v9, %v69_v33  ;;  %v388_v37 = vsub.f32 %v296_v10, %v67_v34 }
  0x85   :  { %v79_v39 = vmul.f32 %v386_v36, %v386_v36  ;;  %v77_v40 = vmul.f32 %v388_v37, %v388_v37 }
  0x87   :  { %v90_v41 = vsel %vm42_vm0, %v79_v39, 0.0  ;;  %v84_v42 = vsel %vm42_vm0, %v77_v40, 0.0 }
  0x88   :  { %91 = vadd.xlane.f32.xlu2 %v90_v41  ;;  %85 = vadd.xlane.f32.xlu0 %v84_v42 }
  0x90   :  { %94 = vadd.xlane.f32.xlu0 %v93_v44 }
  0xf3   :  { %v89_v46 = vpop.xlane.xlu1 %88  ;;  %v83_v47 = vpop.xlane.xlu2 %82 }
  0xf4   :  { %v98_v48 = vmul.f32 %v89_v46, %v369_v19  ;;  %v96_v49 = vmul.f32 %v83_v47, %v369_v19 }
  0xf6   :  { %v103_v50 = vadd.f32 1e-05, %v98_v48  ;;  %v101_v51 = vadd.f32 1e-05, %v96_v49 }
  0xf8   :  { %313 = vrsqrt.f32 %v103_v50  ;;  %vm132_vm4 = vweird.f32 %v103_v50  ;;  %vm112_vm8 = vweird.f32 %v101_v51 }
  0xf9   :  { %315 = vrsqrt.f32 %v101_v51 }
  0xfb   :  { %v92_v53 = vpop.xlane.xlu2 %91  ;;  %v86_v54 = vpop.xlane.xlu0 %85 }
  0xfc   :  { %v99_v55 = vmul.f32 %v92_v53, %v369_v19  ;;  %v97_v56 = vmul.f32 %v86_v54, %v369_v19 }
  0xfe   :  { %v314_v57 = vpop.eup %313  ;;  %v104_v58 = vadd.f32 1e-05, %v99_v55  ;;  %v102_v59 = vadd.f32 1e-05, %v97_v56  ;;  %v184_v55 = vld [vmem:[#allocation2 + $0x10] sm:$0xff]  ;;  %v182_v56 = vld [vmem:[#allocation2] sm:$0xff] }
  0xff   :  { %v316_v60 = vpop.eup %315  ;;  %v127_v61 = vmul.f32 %v314_v57, %v103_v50  ;;  %vm133_vm5 = vweird.f32 %v314_v57 }
 0x100   :  { %v107_v62 = vmul.f32 %v316_v60, %v101_v51  ;;  %317 = vrsqrt.f32 %v104_v58  ;;  %vm113_vm6 = vweird.f32 %v316_v60  ;;  %vm134_vm7 = vmor %vm132_vm4, %vm133_vm5  ;;  %vm142_vm10 = vweird.f32 %v104_v58 }
 0x101   :  { %v128_v63 = vmul.f32 %v314_v57, %v127_v61  ;;  %319 = vrsqrt.f32 %v102_v59  ;;  %vm114_vm9 = vmor %vm112_vm8, %vm113_vm6  ;;  %vm122_vm14 = vweird.f32 %v102_v59  ;;  %vm30_vm5 = vcmask 779264   ;;  %v310_v61 = vld [vmem:[%s466_s2] ss:$0 sm:$0xff] }
 0x102   :  { %v108_v0 = vmul.f32 %v316_v60, %v107_v62  ;;  %31 = vst.msk [vmem:[#allocation2 + $0x20] sm:$0x3] %vm30_vm5, %v324_v3  ;;  %v183_v62 = vld [vmem:[#allocation2 + $0x8] sm:$0xff] }
 0x103   :  { %v129_v1 = vmul.f32 0.5, %v128_v63  ;;  %v95_v2 = vpop.xlane.xlu0 %94 }
 0x104   :  { %v109_v4 = vmul.f32 0.5, %v108_v0  ;;  %v100_v5 = vmul.f32 %v95_v2, %v369_v19 }
 0x105   :  { %v130_v6 = vsub.f32 1.5, %v129_v1 }
 0x106   :  { %v318_v7 = vpop.eup %317  ;;  %v110_v8 = vsub.f32 1.5, %v109_v4  ;;  %v105_v9 = vadd.f32 1e-05, %v100_v5 }
 0x107   :  { %v320_v10 = vpop.eup %319  ;;  %v131_v11 = vmul.f32 %v314_v57, %v130_v6  ;;  %v137_v12 = vmul.f32 %v318_v7, %v104_v58  ;;  %vm143_vm11 = vweird.f32 %v318_v7 }
 0x108   :  { %v111_v13 = vmul.f32 %v316_v60, %v110_v8  ;;  %v117_v14 = vmul.f32 %v320_v10, %v102_v59  ;;  %321 = vrsqrt.f32 %v105_v9  ;;  %vm123_vm12 = vweird.f32 %v320_v10  ;;  %vm144_vm13 = vmor %vm142_vm10, %vm143_vm11 }
 0x109   :  { %v138_v15 = vmul.f32 %v318_v7, %v137_v12  ;;  %v135_v17 = vsel %vm134_vm7, %v314_v57, %v131_v11  ;;  %vm124_vm15 = vmor %vm122_vm14, %vm123_vm12  ;;  %vm152_vm2 = vweird.f32 %v105_v9 }
 0x10a   :  { %v118_v16 = vmul.f32 %v320_v10, %v117_v14  ;;  %v115_v19 = vsel %vm114_vm9, %v316_v60, %v111_v13  ;;  %v158_v23 = vmul.f32 %v135_v17, %v373_v24  ;;  %v309_v24 = vld [vmem:[%s465_s4] ss:$0 sm:$0xff] }
 0x10b   :  { %v139_v18 = vmul.f32 0.5, %v138_v15  ;;  %v156_v28 = vmul.f32 %v115_v19, %v375_v25 }
 0x10c   :  { %v119_v20 = vmul.f32 0.5, %v118_v16  ;;  %v167_v39 = vmul.f32 %v308_v27, %v158_v23 }
 0x10d   :  { %v140_v21 = vsub.f32 1.5, %v139_v18  ;;  %v165_v25 = vmul.f32 %v308_v27, %v156_v28 }
 0x10e   :  { %v322_v22 = vpop.eup %321  ;;  %v120_v26 = vsub.f32 1.5, %v119_v20  ;;  %v176_v45 = vadd.f32 %v309_v24, %v167_v39 }
 0x10f   :  { %v141_v29 = vmul.f32 %v318_v7, %v140_v21  ;;  %v147_v30 = vmul.f32 %v322_v22, %v105_v9  ;;  %vm153_vm1 = vweird.f32 %v322_v22  ;;  %v174_v48 = vadd.f32 %v309_v24, %v165_v25 }
 0x110   :  { %v121_v31 = vmul.f32 %v320_v10, %v120_v26  ;;  %vm154_vm4 = vmor %vm152_vm2, %vm153_vm1 }
 0x111   :  { %v145_v32 = vsel %vm144_vm13, %v318_v7, %v141_v29  ;;  %v148_v33 = vmul.f32 %v322_v22, %v147_v30  ;;  %v186_v7 = vld [vmem:[#allocation2 + $0x20] sm:$0x3] }
 0x112   :  { %v159_v34 = vmul.f32 %v145_v32, %v386_v36  ;;  %v125_v35 = vsel %vm124_vm15, %v320_v10, %v121_v31 }
 0x113   :  { %v157_v40 = vmul.f32 %v125_v35, %v388_v37  ;;  %v149_v41 = vmul.f32 0.5, %v148_v33 }
 0x114   :  { %v168_v42 = vmul.f32 %v308_v27, %v159_v34 }
 0x115   :  { %v150_v43 = vsub.f32 1.5, %v149_v41  ;;  %v166_v44 = vmul.f32 %v308_v27, %v157_v40 }
 0x116   :  { %v177_v46 = vadd.f32 %v309_v24, %v168_v42 }
 0x117   :  { %v151_v47 = vmul.f32 %v322_v22, %v150_v43  ;;  %v175_v36 = vadd.f32 %v309_v24, %v166_v44 }
 0x118   :  { %v180_v49 = vpack.c.bf16 %v177_v46, %v176_v45 }
 0x119   :  { %v155_v50 = vsel %vm154_vm4, %v322_v22, %v151_v47  ;;  %v179_v51 = vpack.c.bf16 %v175_v36, %v174_v48 }
 0x11a   :  { %289 = vmatmul.msk.bf16.vlgmr.msra.gmra.mxu1 %vm42_vm0, %v180_v49  ;;  %v160_v37 = vmul.f32 %v155_v50, %v390_v38  ;;  %v185_v38 = vld [vmem:[#allocation2 + $0x18] sm:$0xff] }
 0x11b   :  { %288 = vmatmul.msk.bf16.vlgmr.msra.gmra.mxu0 %vm42_vm0, %v179_v51 }
 0x11c   :  { %v169_v52 = vmul.f32 %v308_v27, %v160_v37 }
 0x11e   :  { %v178_v53 = vadd.f32 %v309_v24, %v169_v52 }
 0x120   :  { %v181_v54 = vpack.c.bf16 %v178_v53, %v178_v53 }
 0x122   :  { %290 = vmatmul.msk.bf16.vlgmr.msra.gmra.mxu2 %vm42_vm0, %v181_v54  ;;  %vm269_vm0 = vcmask 781312  }
 0x197   :  { %v226_v57 = vpop.f32.mrf.mxu1 }
 0x198   :  { %v221_v58 = vpop.f32.mrf.mxu0  ;;  %v237_v59 = vadd.f32 %v226_v57, %v184_v55 }
 0x199   :  { %v235_v60 = vadd.f32 %v221_v58, %v182_v56 }
 0x19a   :  { %243 = vst.msk [vmem:[#allocation2 + $0x10] sm:$0xff] %vm25_vm3, %v237_v59 }
 0x19b   :  { %241 = vst.msk [vmem:[#allocation2] sm:$0xff] %vm25_vm3, %v235_v60 }
 0x19f   :  { %v228_v63 = vpop.f32.mrf.mxu1 }
 0x1a0   :  { %v223_v0 = vpop.f32.mrf.mxu0  ;;  %v238_v1 = vadd.f32 %v228_v63, %v185_v38 }
 0x1a1   :  { %v252_v2 = vld [vmem:[#allocation2 + $0x10] sm:$0xff]  ;;  %v236_v3 = vadd.f32 %v223_v0, %v183_v62 }
 0x1a2   :  { %v250_v4 = vld [vmem:[#allocation2] sm:$0xff]  ;;  %v261_v5 = vadd.f32 %v310_v61, %v252_v2  ;;  %244 = vst.msk [vmem:[#allocation2 + $0x18] sm:$0xff] %vm25_vm3, %v238_v1 }
 0x1a3   :  { %v259_v6 = vadd.f32 %v310_v61, %v250_v4  ;;  %242 = vst.msk [vmem:[#allocation2 + $0x8] sm:$0xff] %vm25_vm3, %v236_v3  ;;  %vm274_vm3 = vcmask 778240  }
 0x1a4   :  { %v266_v8 = vpack.c.bf16 %v261_v5, %v261_v5 }
 0x1a5   :  { %v264_v9 = vpack.c.bf16 %v259_v6, %v259_v6  ;;  %v231_v10 = vpop.f32.mrf.mxu2 }
 0x1a6   :  { %272 = vst.msk [vmem:[%s468_s5 + $0x8] sm:$0xf] %vm269_vm0, %v266_v8  ;;  %v239_v11 = vadd.f32 %v231_v10, %v186_v7 }
 0x1a7   :  { %270 = vst.msk [vmem:[%s468_s5] sm:$0xf] %vm269_vm0, %v264_v9 }
 0x1a8   :  { %246 = vst.msk [vmem:[#allocation2 + $0x20] sm:$0x3] %vm30_vm5, %v239_v11 }
 0x1a9   :  { %v253_v12 = vld [vmem:[#allocation2 + $0x18] sm:$0xff] }
 0x1aa   :  { %v251_v13 = vld [vmem:[#allocation2 + $0x8] sm:$0xff]  ;;  %v262_v14 = vadd.f32 %v310_v61, %v253_v12 }
 0x1ab   :  { %v260_v15 = vadd.f32 %v310_v61, %v251_v13 }
 0x1ac   :  { %v267_v16 = vpack.c.bf16 %v262_v14, %v262_v14 }
 0x1ad   :  { %v265_v17 = vpack.c.bf16 %v260_v15, %v260_v15  ;;  %v233_v18 = vpop.f32.mrf.mxu2 }
 0x1ae   :  { %273 = vst.msk [vmem:[%s468_s5 + $0xc] sm:$0xf] %vm269_vm0, %v267_v16 }
 0x1af   :  { %271 = vst.msk [vmem:[%s468_s5 + $0x4] sm:$0xf] %vm269_vm0, %v265_v17  ;;  %v254_v19 = vld [vmem:[#allocation2 + $0x20] sm:$0x3] }
 0x1b0   :  { %v263_v20 = vadd.f32 %v310_v61, %v254_v19 }
 0x1b2   :  { %v268_v21 = vpack.c.bf16 %v263_v20, %v263_v20 }
 0x1b4   :  { %275 = vst.msk [vmem:[%s468_s5 + $0x10] sm:$0x1] %vm274_vm3, %v268_v21 }

// kernel: vit_forward.12
= control target key start
LH: loop header
LB: loop body
LE: loop exit
PB: predicated region body
PF: predicated region fallthrough
CT: control target
= control target key end

     0   :  { %vm19_vm0 = vcmask 261120   ;;  %v161_v1 = vmov 0.0   ;;  %vm66_vm1 = vcmask 392192   ;;  %vm120_vm2 = vcmask 257024   ;;  %s220_s1 = inlined_call_operand.vmem [shape: bf16[48,32], index: 1, kind: input, shape index: {}]   ;;  %s221_s2 = inlined_call_operand.vmem [shape: f32[1,32], index: 2, kind: input, shape index: {}]   ;;  %s222_s0 = inlined_call_operand.vmem [shape: bf16[32,48], index: 0, kind: input, shape index: {}]   ;;  %s223_s3 = inlined_call_operand.vmem [shape: bf16[32,32], index: 3, kind: output, shape index: {}]  }
   0x1   :  { %v155_v0 = vld [vmem:[%s220_s1 + $0x10] sm:$0xff]  ;;  %20 = vst.msk [vmem:[#allocation2] sm:$0xff] %vm19_vm0, %v161_v1  ;;  %v154_v2 = vld [vmem:[%s220_s1 + $0x8] sm:$0xff]  ;;  %v153_v3 = vld [vmem:[%s220_s1] sm:$0xff] }
   0x2   :  { %21 = vst.msk [vmem:[#allocation2 + $0x8] sm:$0xff] %vm19_vm0, %v161_v1  ;;  %78 = vmatpush.bf16.msra.mxu0 %v155_v0  ;;  %156 = vmatpush.bf16.msra.mxu1 %v155_v0  ;;  %v151_v4 = vld [vmem:[%s222_s0] sm:$0xff]  ;;  %v152_v5 = vld [vmem:[%s222_s0 + $0x8] sm:$0xff] }
   0x3   :  { %22 = vst.msk [vmem:[#allocation2 + $0x10] sm:$0xff] %vm19_vm0, %v161_v1  ;;  %v160_v14 = vld [vmem:[%s221_s2] ss:$0 sm:$0xff] }
   0x4   :  { %23 = vst.msk [vmem:[#allocation2 + $0x18] sm:$0xff] %vm19_vm0, %v161_v1 }
   0x6   :  { %79 = vmatpush.bf16.msra.mxu0 %v154_v2  ;;  %157 = vmatpush.bf16.msra.mxu1 %v154_v2 }
   0x8   :  { %v28_v6 = vld [vmem:[#allocation2] sm:$0xff] }
   0x9   :  { %v29_v12 = vld [vmem:[#allocation2 + $0x8] sm:$0xff] }
   0xa   :  { %80 = vmatpush.bf16.msra.mxu0 %v153_v3  ;;  %158 = vmatpush.bf16.msra.mxu1 %v153_v3  ;;  %v30_v7 = vld [vmem:[#allocation2 + $0x10] sm:$0xff] }
   0xb   :  { %v31_v13 = vld [vmem:[#allocation2 + $0x18] sm:$0xff] }
   0xd   :  { %149 = vmatmul.msk.bf16.vlgmr.msra.gmra.mxu0 %vm66_vm1, %v151_v4  ;;  %150 = vmatmul.msk.bf16.vlgmr.msra.gmra.mxu1 %vm66_vm1, %v152_v5 }
  0x8a   :  { %v82_v8 = vpop.f32.mrf.mxu0  ;;  %v87_v9 = vpop.f32.mrf.mxu1 }
  0x8b   :  { %v92_v10 = vadd.f32 %v82_v8, %v28_v6  ;;  %v94_v11 = vadd.f32 %v87_v9, %v30_v7 }
  0x8d   :  { %97 = vst.msk [vmem:[#allocation2] sm:$0xff] %vm19_vm0, %v92_v10 }
  0x8e   :  { %99 = vst.msk [vmem:[#allocation2 + $0x10] sm:$0xff] %vm19_vm0, %v94_v11 }
  0x92   :  { %v84_v15 = vpop.f32.mrf.mxu0  ;;  %v89_v16 = vpop.f32.mrf.mxu1 }
  0x93   :  { %v93_v17 = vadd.f32 %v84_v15, %v29_v12  ;;  %v95_v18 = vadd.f32 %v89_v16, %v31_v13 }
  0x94   :  { %v104_v19 = vld [vmem:[#allocation2] sm:$0xff] }
  0x95   :  { %v112_v20 = vadd.f32 %v160_v14, %v104_v19  ;;  %v106_v21 = vld [vmem:[#allocation2 + $0x10] sm:$0xff]  ;;  %98 = vst.msk [vmem:[#allocation2 + $0x8] sm:$0xff] %vm19_vm0, %v93_v17 }
  0x96   :  { %v114_v22 = vadd.f32 %v160_v14, %v106_v21  ;;  %100 = vst.msk [vmem:[#allocation2 + $0x18] sm:$0xff] %vm19_vm0, %v95_v18 }
  0x97   :  { %v116_v23 = vpack.c.bf16 %v112_v20, %v112_v20 }
  0x98   :  { %v118_v24 = vpack.c.bf16 %v114_v22, %v114_v22 }
  0x99   :  { %121 = vst.msk [vmem:[%s223_s3] sm:$0xf] %vm120_vm2, %v116_v23 }
  0x9a   :  { %123 = vst.msk [vmem:[%s223_s3 + $0x8] sm:$0xf] %vm120_vm2, %v118_v24 }
  0x9c   :  { %v105_v25 = vld [vmem:[#allocation2 + $0x8] sm:$0xff] }
  0x9d   :  { %v113_v26 = vadd.f32 %v160_v14, %v105_v25  ;;  %v107_v27 = vld [vmem:[#allocation2 + $0x18] sm:$0xff] }
  0x9e   :  { %v115_v28 = vadd.f32 %v160_v14, %v107_v27 }
  0x9f   :  { %v117_v29 = vpack.c.bf16 %v113_v26, %v113_v26 }
  0xa0   :  { %v119_v30 = vpack.c.bf16 %v115_v28, %v115_v28 }
  0xa1   :  { %122 = vst.msk [vmem:[%s223_s3 + $0x4] sm:$0xf] %vm120_vm2, %v117_v29 }
  0xa2   :  { %124 = vst.msk [vmem:[%s223_s3 + $0xc] sm:$0xf] %vm120_vm2, %v119_v30 }

// kernel: vit_forward.17
= control target key start
LH: loop header
LB: loop body
LE: loop exit
PB: predicated region body
PF: predicated region fallthrough
CT: control target
= control target key end

     0   :  { %vm21_vm0 = vcmask 261120   ;;  %v278_v2 = vmov 0.0   ;;  %vm26_vm1 = vcmask 254976   ;;  %vm190_vm2 = vcmask 257024   ;;  %s378_s1 = inlined_call_operand.vmem [shape: bf16[128,32], index: 1, kind: input, shape index: {}]   ;;  %s379_s2 = inlined_call_operand.vmem [shape: f32[1,32], index: 2, kind: input, shape index: {}]   ;;  %s380_s0 = inlined_call_operand.vmem [shape: bf16[34,128], index: 0, kind: input, shape index: {}]   ;;  %s381_s3 = inlined_call_operand.vmem [shape: bf16[34,32], index: 3, kind: input, shape index: {}]   ;;  %s382_s4 = inlined_call_operand.vmem [shape: bf16[34,32], index: 4, kind: output, shape index: {}]  }
   0x1   :  { %v250_v0 = vld [vmem:[%s378_s1 + $0x38] sm:$0xff]  ;;  %v249_v1 = vld [vmem:[%s378_s1 + $0x30] sm:$0xff]  ;;  %22 = vst.msk [vmem:[#allocation2] sm:$0xff] %vm21_vm0, %v278_v2  ;;  %v248_v3 = vld [vmem:[%s378_s1 + $0x28] sm:$0xff]  ;;  %vm195_vm3 = vcmask 253952  }
   0x2   :  { %118 = vmatpush.bf16.msra.mxu0 %v250_v0  ;;  %260 = vmatpush.bf16.msra.mxu1 %v250_v0  ;;  %23 = vst.msk [vmem:[#allocation2 + $0x8] sm:$0xff] %vm21_vm0, %v278_v2  ;;  %v247_v4 = vld [vmem:[%s378_s1 + $0x20] sm:$0xff]  ;;  %v246_v5 = vld [vmem:[%s378_s1 + $0x18] sm:$0xff]  ;;  %v245_v6 = vld [vmem:[%s378_s1 + $0x10] sm:$0xff] }
   0x3   :  { %261 = vmatpush.bf16.msra.mxu2 %v250_v0  ;;  %24 = vst.msk [vmem:[#allocation2 + $0x10] sm:$0xff] %vm21_vm0, %v278_v2  ;;  %v244_v7 = vld [vmem:[%s378_s1 + $0x8] sm:$0xff]  ;;  %v32_v8 = vld [vmem:[%s380_s0 + $0x10] sm:$0x1]  ;;  %v243_v9 = vld [vmem:[%s378_s1] sm:$0xff] }
   0x4   :  { %25 = vst.msk [vmem:[#allocation2 + $0x18] sm:$0xff] %vm21_vm0, %v278_v2  ;;  %v63_v10 = vunpack.c.l.b16 %v32_v8  ;;  %v241_v11 = vld [vmem:[%s380_s0] sm:$0xff]  ;;  %v242_v12 = vld [vmem:[%s380_s0 + $0x8] sm:$0xff]  ;;  %v174_v39 = vld [vmem:[%s381_s3 + $0x10] sm:$0x1] }
   0x5   :  { %27 = vst.msk [vmem:[#allocation2 + $0x20] sm:$0x3] %vm26_vm1, %v278_v2  ;;  %v252_v21 = vld [vmem:[%s381_s3] sm:$0xff]   ;;  %v259_v25 = vld [vmem:[%s381_s3 + $0x8] sm:$0xff]   ;;  %v179_v44 = vunpack.c.l.bf16 %v174_v39 }
   0x6   :  { %119 = vmatpush.bf16.msra.mxu0 %v249_v1  ;;  %262 = vmatpush.bf16.msra.mxu1 %v249_v1  ;;  %v66_v13 = vpack.c.b16 %v63_v10, %v63_v10  ;;  %v277_v24 = vld [vmem:[%s379_s2] ss:$0 sm:$0xff]  ;;  %v253_v30 = vunpack.c.l.bf16 %v252_v21  ;;  %v257_v34 = vunpack.c.l.bf16 %v259_v25  ;;  %v254_v46 = vunpack.c.h.bf16 %v252_v21 }
   0x7   :  { %263 = vmatpush.bf16.msra.mxu2 %v249_v1  ;;  %v258_v49 = vunpack.c.h.bf16 %v259_v25 }
   0x8   :  { %v33_v14 = vld [vmem:[#allocation2] sm:$0xff] }
   0x9   :  { %v34_v22 = vld [vmem:[#allocation2 + $0x8] sm:$0xff] }
   0xa   :  { %120 = vmatpush.bf16.msra.mxu0 %v248_v3  ;;  %264 = vmatpush.bf16.msra.mxu1 %v248_v3  ;;  %v35_v15 = vld [vmem:[#allocation2 + $0x10] sm:$0xff] }
   0xb   :  { %265 = vmatpush.bf16.msra.mxu2 %v248_v3  ;;  %v36_v23 = vld [vmem:[#allocation2 + $0x18] sm:$0xff] }
   0xc   :  { %v37_v20 = vld [vmem:[#allocation2 + $0x20] sm:$0x3] }
   0xe   :  { %121 = vmatpush.bf16.msra.mxu0 %v247_v4  ;;  %266 = vmatpush.bf16.msra.mxu1 %v247_v4 }
   0xf   :  { %267 = vmatpush.bf16.msra.mxu2 %v247_v4 }
  0x12   :  { %122 = vmatpush.bf16.msra.mxu0 %v246_v5  ;;  %268 = vmatpush.bf16.msra.mxu1 %v246_v5 }
  0x13   :  { %269 = vmatpush.bf16.msra.mxu2 %v246_v5 }
  0x16   :  { %123 = vmatpush.bf16.msra.mxu0 %v245_v6  ;;  %270 = vmatpush.bf16.msra.mxu1 %v245_v6 }
  0x17   :  { %271 = vmatpush.bf16.msra.mxu2 %v245_v6 }
  0x1a   :  { %124 = vmatpush.bf16.msra.mxu0 %v244_v7  ;;  %272 = vmatpush.bf16.msra.mxu1 %v244_v7 }
  0x1b   :  { %273 = vmatpush.bf16.msra.mxu2 %v244_v7 }
  0x1e   :  { %125 = vmatpush.bf16.msra.mxu0 %v243_v9  ;;  %274 = vmatpush.bf16.msra.mxu1 %v243_v9 }
  0x1f   :  { %275 = vmatpush.bf16.msra.mxu2 %v243_v9 }
  0x21   :  { %126 = vmatmul.bf16.vlgmr.msra.gmra.mxu0 %v241_v11  ;;  %131 = vmatmul.bf16.vlgmr.msra.gmra.mxu1 %v242_v12 }
  0x22   :  { %136 = vmatmul.bf16.vlgmr.msra.gmra.mxu2 %v66_v13 }
  0x9e   :  { %v127_v16 = vpop.f32.mrf.mxu0  ;;  %v132_v17 = vpop.f32.mrf.mxu1 }
  0x9f   :  { %v141_v18 = vadd.f32 %v127_v16, %v33_v14  ;;  %v143_v19 = vadd.f32 %v132_v17, %v35_v15 }
  0xa1   :  { %147 = vst.msk [vmem:[#allocation2] sm:$0xff] %vm21_vm0, %v141_v18 }
  0xa2   :  { %149 = vst.msk [vmem:[#allocation2 + $0x10] sm:$0xff] %vm21_vm0, %v143_v19 }
  0xa5   :  { %v137_v26 = vpop.f32.mrf.mxu2 }
  0xa6   :  { %v145_v27 = vadd.f32 %v137_v26, %v37_v20  ;;  %v129_v28 = vpop.f32.mrf.mxu0  ;;  %v134_v29 = vpop.f32.mrf.mxu1 }
  0xa7   :  { %v142_v31 = vadd.f32 %v129_v28, %v34_v22  ;;  %v144_v32 = vadd.f32 %v134_v29, %v36_v23 }
  0xa8   :  { %v156_v33 = vld [vmem:[#allocation2] sm:$0xff]  ;;  %152 = vst.msk [vmem:[#allocation2 + $0x20] sm:$0x3] %vm26_vm1, %v145_v27 }
  0xa9   :  { %v165_v35 = vadd.f32 %v277_v24, %v156_v33  ;;  %v158_v36 = vld [vmem:[#allocation2 + $0x10] sm:$0xff]  ;;  %148 = vst.msk [vmem:[#allocation2 + $0x8] sm:$0xff] %vm21_vm0, %v142_v31 }
  0xaa   :  { %v167_v37 = vadd.f32 %v277_v24, %v158_v36  ;;  %150 = vst.msk [vmem:[#allocation2 + $0x18] sm:$0xff] %vm21_vm0, %v144_v32 }
  0xab   :  { %v180_v38 = vadd.f32 %v253_v30, %v165_v35 }
  0xac   :  { %v182_v40 = vadd.f32 %v257_v34, %v167_v37 }
  0xad   :  { %v185_v41 = vpack.c.bf16 %v180_v38, %v180_v38  ;;  %v139_v42 = vpop.f32.mrf.mxu2 }
  0xae   :  { %v187_v43 = vpack.c.bf16 %v182_v40, %v182_v40 }
  0xaf   :  { %191 = vst.msk [vmem:[%s382_s4] sm:$0xf] %vm190_vm2, %v185_v41  ;;  %v160_v45 = vld [vmem:[#allocation2 + $0x20] sm:$0x3] }
  0xb0   :  { %193 = vst.msk [vmem:[%s382_s4 + $0x8] sm:$0xf] %vm190_vm2, %v187_v43  ;;  %v169_v47 = vadd.f32 %v277_v24, %v160_v45  ;;  %v157_v48 = vld [vmem:[#allocation2 + $0x8] sm:$0xff] }
  0xb1   :  { %v166_v50 = vadd.f32 %v277_v24, %v157_v48  ;;  %v159_v51 = vld [vmem:[#allocation2 + $0x18] sm:$0xff] }
  0xb2   :  { %v184_v52 = vadd.f32 %v179_v44, %v169_v47  ;;  %v168_v53 = vadd.f32 %v277_v24, %v159_v51 }
  0xb3   :  { %v181_v54 = vadd.f32 %v254_v46, %v166_v50 }
  0xb4   :  { %v189_v55 = vpack.c.bf16 %v184_v52, %v184_v52  ;;  %v183_v56 = vadd.f32 %v258_v49, %v168_v53 }
  0xb5   :  { %v186_v57 = vpack.c.bf16 %v181_v54, %v181_v54 }
  0xb6   :  { %196 = vst.msk [vmem:[%s382_s4 + $0x10] sm:$0x1] %vm195_vm3, %v189_v55  ;;  %v188_v58 = vpack.c.bf16 %v183_v56, %v183_v56 }
  0xb7   :  { %192 = vst.msk [vmem:[%s382_s4 + $0x4] sm:$0xf] %vm190_vm2, %v186_v57 }
  0xb8   :  { %194 = vst.msk [vmem:[%s382_s4 + $0xc] sm:$0xf] %vm190_vm2, %v188_v58 }

// kernel: vit_forward.16
= control target key start
LH: loop header
LB: loop body
LE: loop exit
PB: predicated region body
PF: predicated region fallthrough
CT: control target
= control target key end

     0   :  { %vm40_vm0 = vcmask 261120   ;;  %vm53_vm1 = vcmask 254976   ;;  %v563_v13 = vmov 32.0   ;;  %s849_s0 = inlined_call_operand.vmem [shape: bf16[34,32], index: 0, kind: input, shape index: {}]   ;;  %s850_s3 = inlined_call_operand.vmem [shape: f32[1,32], index: 3, kind: input, shape index: {}]   ;;  %s851_s4 = inlined_call_operand.vmem [shape: f32[1,32], index: 4, kind: input, shape index: {}]   ;;  %s852_s2 = inlined_call_operand.vmem [shape: f32[1,128], index: 2, kind: input, shape index: {}]   ;;  %s853_s1 = inlined_call_operand.vmem [shape: bf16[32,128], index: 1, kind: input, shape index: {}]   ;;  %s854_s5 = inlined_call_operand.vmem [shape: bf16[34,128], index: 5, kind: output, shape index: {}]  }
   0x1   :  { %v530_v0 = vld [vmem:[%s849_s0 + $0x8] sm:$0xff]   ;;  %v513_v1 = vld [vmem:[%s849_s0] sm:$0xff]   ;;  %v34_v2 = vld [vmem:[%s849_s0 + $0x10] sm:$0x1]  ;;  %541 = vrcp.f32 %v563_v13 }
   0x2   :  { %v518_v3 = vunpack.c.l.bf16 %v530_v0  ;;  %v514_v4 = vunpack.c.l.bf16 %v513_v1  ;;  %v39_v5 = vunpack.c.l.bf16 %v34_v2  ;;  %v519_v9 = vunpack.c.h.bf16 %v530_v0  ;;  %v511_v45 = vld [vmem:[%s853_s1 + $0x8] sm:$0xff]  ;;  %v510_v52 = vld [vmem:[%s853_s1] sm:$0xff] }
   0x3   :  { %v515_v10 = vunpack.c.h.bf16 %v513_v1  ;;  %216 = vmatpush.bf16.msra.mxu0 %v511_v45  ;;  %532 = vmatpush.bf16.msra.mxu1 %v511_v45 }
   0x4   :  { %v47_v6 = vsel %vm40_vm0, %v518_v3, 0.0  ;;  %v41_v7 = vsel %vm40_vm0, %v514_v4, 0.0  ;;  %v54_v8 = vsel %vm53_vm1, %v39_v5, 0.0  ;;  %v50_v11 = vsel %vm40_vm0, %v519_v9, 0.0  ;;  %533 = vmatpush.bf16.msra.mxu2 %v511_v45 }
   0x5   :  { %48 = vadd.xlane.f32.xlu1 %v47_v6  ;;  %42 = vadd.xlane.f32.xlu0 %v41_v7  ;;  %v44_v12 = vsel %vm40_vm0, %v515_v10, 0.0 }
   0x6   :  { %55 = vadd.xlane.f32.xlu2 %v54_v8 }
   0x7   :  { %v542_v14 = vpop.eup %541  ;;  %217 = vmatpush.bf16.msra.mxu0 %v510_v52  ;;  %534 = vmatpush.bf16.msra.mxu1 %v510_v52 }
   0x8   :  { %v58_v15 = vmul.f32 32.0, %v542_v14  ;;  %vm62_vm2 = vweird.f32 %v542_v14  ;;  %535 = vmatpush.bf16.msra.mxu2 %v510_v52 }
   0xa   :  { %v59_v16 = vsub.f32 1.0, %v58_v15 }
   0xc   :  { %v60_v17 = vmul.f32 %v542_v14, %v59_v16 }
   0xd   :  { %51 = vadd.xlane.f32.xlu1 %v50_v11  ;;  %45 = vadd.xlane.f32.xlu0 %v44_v12 }
   0xe   :  { %v61_v18 = vadd.f32 %v542_v14, %v60_v17 }
  0x10   :  { %v609_v19 = vsel %vm62_vm2, %v542_v14, %v61_v18 }
  0x78   :  { %v49_v20 = vpop.xlane.xlu1 %48  ;;  %v43_v21 = vpop.xlane.xlu0 %42 }
  0x79   :  { %v66_v22 = vmul.f32 %v609_v19, %v49_v20  ;;  %v64_v23 = vmul.f32 %v609_v19, %v43_v21  ;;  %v56_v28 = vpop.xlane.xlu2 %55 }
  0x7a   :  { %v68_v35 = vmul.f32 %v609_v19, %v56_v28  ;;  %v538_v28 = vld [vmem:[%s850_s3] ss:$0 sm:$0xff] }
  0x7b   :  { %v613_v24 = vsub.f32 %v518_v3, %v66_v22  ;;  %v615_v25 = vsub.f32 %v514_v4, %v64_v23  ;;  %v564_v3 = vmov 0.0  }
  0x7c   :  { %v630_v38 = vsub.f32 %v39_v5, %v68_v35  ;;  %29 = vst [vmem:[#allocation2 + $0x18] sm:$0x3] %v564_v3 }
  0x7d   :  { %v76_v26 = vmul.f32 %v613_v24, %v613_v24  ;;  %v74_v27 = vmul.f32 %v615_v25, %v615_v25 }
  0x7e   :  { %v78_v43 = vmul.f32 %v630_v38, %v630_v38 }
  0x7f   :  { %v85_v29 = vsel %vm40_vm0, %v76_v26, 0.0  ;;  %v79_v30 = vsel %vm40_vm0, %v74_v27, 0.0 }
  0x80   :  { %86 = vadd.xlane.f32.xlu1 %v85_v29  ;;  %v52_v31 = vpop.xlane.xlu1 %51  ;;  %80 = vadd.xlane.f32.xlu2 %v79_v30  ;;  %v46_v32 = vpop.xlane.xlu0 %45  ;;  %v91_v44 = vsel %vm53_vm1, %v78_v43, 0.0 }
  0x81   :  { %v67_v33 = vmul.f32 %v609_v19, %v52_v31  ;;  %v65_v34 = vmul.f32 %v609_v19, %v46_v32 }
  0x83   :  { %v626_v36 = vsub.f32 %v519_v9, %v67_v33  ;;  %v628_v37 = vsub.f32 %v515_v10, %v65_v34 }
  0x85   :  { %v77_v39 = vmul.f32 %v626_v36, %v626_v36  ;;  %v75_v40 = vmul.f32 %v628_v37, %v628_v37 }
  0x87   :  { %v88_v41 = vsel %vm40_vm0, %v77_v39, 0.0  ;;  %v82_v42 = vsel %vm40_vm0, %v75_v40, 0.0 }
  0x88   :  { %89 = vadd.xlane.f32.xlu2 %v88_v41  ;;  %83 = vadd.xlane.f32.xlu0 %v82_v42 }
  0x90   :  { %92 = vadd.xlane.f32.xlu0 %v91_v44 }
  0xf3   :  { %v87_v46 = vpop.xlane.xlu1 %86  ;;  %v81_v47 = vpop.xlane.xlu2 %80 }
  0xf4   :  { %v96_v48 = vmul.f32 %v87_v46, %v609_v19  ;;  %v94_v49 = vmul.f32 %v81_v47, %v609_v19 }
  0xf6   :  { %v101_v50 = vadd.f32 1e-05, %v96_v48  ;;  %v99_v51 = vadd.f32 1e-05, %v94_v49 }
  0xf8   :  { %543 = vrsqrt.f32 %v101_v50  ;;  %vm130_vm3 = vweird.f32 %v101_v50  ;;  %vm110_vm7 = vweird.f32 %v99_v51 }
  0xf9   :  { %545 = vrsqrt.f32 %v99_v51 }
  0xfb   :  { %v90_v53 = vpop.xlane.xlu2 %89  ;;  %v84_v54 = vpop.xlane.xlu0 %83 }
  0xfc   :  { %v97_v55 = vmul.f32 %v90_v53, %v609_v19  ;;  %v95_v56 = vmul.f32 %v84_v54, %v609_v19 }
  0xfe   :  { %v544_v57 = vpop.eup %543  ;;  %v102_v58 = vadd.f32 1e-05, %v97_v55  ;;  %v100_v59 = vadd.f32 1e-05, %v95_v56  ;;  %v675_v56 = vld [vmem:[%s852_s2] ss:$0 sm:$0xff] }
  0xff   :  { %v546_v60 = vpop.eup %545  ;;  %v125_v61 = vmul.f32 %v544_v57, %v101_v50  ;;  %vm131_vm4 = vweird.f32 %v544_v57 }
 0x100   :  { %v105_v62 = vmul.f32 %v546_v60, %v99_v51  ;;  %547 = vrsqrt.f32 %v102_v58  ;;  %vm652_vm5 = vmor %vm130_vm3, %vm131_vm4  ;;  %vm111_vm6 = vweird.f32 %v546_v60  ;;  %vm140_vm9 = vweird.f32 %v102_v58 }
 0x101   :  { %v126_v63 = vmul.f32 %v544_v57, %v125_v61  ;;  %549 = vrsqrt.f32 %v100_v59  ;;  %vm112_vm8 = vmor %vm110_vm7, %vm111_vm6  ;;  %vm120_vm13 = vweird.f32 %v100_v59 }
 0x102   :  { %v106_v0 = vmul.f32 %v546_v60, %v105_v62 }
 0x103   :  { %v127_v1 = vmul.f32 0.5, %v126_v63  ;;  %v93_v2 = vpop.xlane.xlu0 %92 }
 0x104   :  { %v107_v4 = vmul.f32 0.5, %v106_v0  ;;  %v98_v5 = vmul.f32 %v93_v2, %v609_v19 }
 0x105   :  { %v128_v6 = vsub.f32 1.5, %v127_v1 }
 0x106   :  { %v548_v7 = vpop.eup %547  ;;  %v108_v8 = vsub.f32 1.5, %v107_v4  ;;  %v103_v9 = vadd.f32 1e-05, %v98_v5 }
 0x107   :  { %v550_v10 = vpop.eup %549  ;;  %v129_v11 = vmul.f32 %v544_v57, %v128_v6  ;;  %v135_v12 = vmul.f32 %v548_v7, %v102_v58  ;;  %vm141_vm10 = vweird.f32 %v548_v7 }
 0x108   :  { %v109_v14 = vmul.f32 %v546_v60, %v108_v8  ;;  %v115_v15 = vmul.f32 %v550_v10, %v100_v59  ;;  %551 = vrsqrt.f32 %v103_v9  ;;  %vm142_vm11 = vmor %vm140_vm9, %vm141_vm10  ;;  %vm121_vm12 = vweird.f32 %v550_v10 }
 0x109   :  { %v136_v16 = vmul.f32 %v548_v7, %v135_v12  ;;  %v133_v18 = vsel %vm652_vm5, %v544_v57, %v129_v11  ;;  %vm122_vm14 = vmor %vm120_vm13, %vm121_vm12  ;;  %vm150_vm1 = vweird.f32 %v103_v9  ;;  %v184_v11 = vld [vmem:[#allocation2 + $0x18] sm:$0x3] }
 0x10a   :  { %v116_v17 = vmul.f32 %v550_v10, %v115_v15  ;;  %v113_v20 = vsel %vm112_vm8, %v546_v60, %v109_v14  ;;  %v156_v26 = vmul.f32 %v133_v18, %v613_v24  ;;  %v539_v24 = vld [vmem:[%s851_s4] ss:$0 sm:$0xff] }
 0x10b   :  { %v137_v19 = vmul.f32 0.5, %v136_v16  ;;  %v154_v29 = vmul.f32 %v113_v20, %v615_v25 }
 0x10c   :  { %v117_v21 = vmul.f32 0.5, %v116_v17  ;;  %v165_v40 = vmul.f32 %v538_v28, %v156_v26 }
 0x10d   :  { %v138_v22 = vsub.f32 1.5, %v137_v19  ;;  %v163_v43 = vmul.f32 %v538_v28, %v154_v29 }
 0x10e   :  { %v552_v23 = vpop.eup %551  ;;  %v118_v27 = vsub.f32 1.5, %v117_v21  ;;  %v174_v46 = vadd.f32 %v539_v24, %v165_v40 }
 0x10f   :  { %v139_v30 = vmul.f32 %v548_v7, %v138_v22  ;;  %v145_v31 = vmul.f32 %v552_v23, %v103_v9  ;;  %vm151_vm15 = vweird.f32 %v552_v23  ;;  %v172_v49 = vadd.f32 %v539_v24, %v163_v43 }
 0x110   :  { %v119_v32 = vmul.f32 %v550_v10, %v118_v27  ;;  %vm152_vm2 = vmor %vm150_vm1, %vm151_vm15 }
 0x111   :  { %v143_v33 = vsel %vm142_vm11, %v548_v7, %v139_v30  ;;  %v146_v34 = vmul.f32 %v552_v23, %v145_v31 }
 0x112   :  { %v157_v35 = vmul.f32 %v143_v33, %v626_v36  ;;  %v123_v39 = vsel %vm122_vm14, %v550_v10, %v119_v32 }
 0x113   :  { %v155_v41 = vmul.f32 %v123_v39, %v628_v37  ;;  %v147_v42 = vmul.f32 0.5, %v146_v34 }
 0x114   :  { %v166_v25 = vmul.f32 %v538_v28, %v157_v35 }
 0x115   :  { %v148_v44 = vsub.f32 1.5, %v147_v42  ;;  %v164_v45 = vmul.f32 %v538_v28, %v155_v41 }
 0x116   :  { %v175_v47 = vadd.f32 %v539_v24, %v166_v25 }
 0x117   :  { %v149_v48 = vmul.f32 %v552_v23, %v148_v44  ;;  %v173_v36 = vadd.f32 %v539_v24, %v164_v45 }
 0x118   :  { %v178_v50 = vpack.c.bf16 %v175_v47, %v174_v46 }
 0x119   :  { %v153_v51 = vsel %vm152_vm2, %v552_v23, %v149_v48  ;;  %v177_v52 = vpack.c.bf16 %v173_v36, %v172_v49 }
 0x11a   :  { %503 = vmatmul.msk.bf16.vlgmr.msra.gmra.mxu1 %vm40_vm0, %v178_v50  ;;  %v158_v37 = vmul.f32 %v153_v51, %v630_v38 }
 0x11b   :  { %502 = vmatmul.msk.bf16.vlgmr.msra.gmra.mxu0 %vm40_vm0, %v177_v52 }
 0x11c   :  { %v167_v53 = vmul.f32 %v538_v28, %v158_v37 }
 0x11e   :  { %v176_v54 = vadd.f32 %v539_v24, %v167_v53 }
 0x120   :  { %v179_v55 = vpack.c.bf16 %v176_v54, %v176_v54 }
 0x122   :  { %504 = vmatmul.msk.bf16.vlgmr.msra.gmra.mxu2 %vm40_vm0, %v179_v55 }
 0x197   :  { %v224_v57 = vpop.f32.mrf.mxu1 }
 0x198   :  { %v219_v58 = vpop.f32.mrf.mxu0  ;;  %v678_v59 = vadd.f32 %v675_v56, %v224_v57 }
 0x199   :  { %v681_v60 = vadd.f32 %v675_v56, %v219_v58 }
 0x19a   :  { %v684_v38 = vmul.f32 0.70710677, %v678_v59 }
 0x19b   :  { %v687_v61 = vmul.f32 0.70710677, %v681_v60 }
 0x19c   :  { %v350_v62 = vmul.f32 %v684_v38, %v684_v38 }
 0x19d   :  { %v270_v63 = vmul.f32 %v687_v61, %v687_v61 }
 0x19e   :  { %v693_v1 = vmin.f32 %v350_v62, 16.0 }
 0x19f   :  { %v226_v0 = vpop.f32.mrf.mxu1  ;;  %v695_v3 = vmin.f32 %v270_v63, 16.0 }
 0x1a0   :  { %v221_v2 = vpop.f32.mrf.mxu0  ;;  %v352_v4 = vmul.f32 2.1237322e-06, %v693_v1  ;;  %v363_v5 = vmul.f32 3.8918573e-05, %v693_v1  ;;  %v700_v6 = vadd.f32 %v675_v56, %v226_v0 }
 0x1a1   :  { %v272_v7 = vmul.f32 2.1237322e-06, %v695_v3  ;;  %v283_v8 = vmul.f32 3.8918573e-05, %v695_v3  ;;  %v705_v9 = vadd.f32 %v675_v56, %v221_v2 }
 0x1a2   :  { %v364_v10 = vadd.f32 0.001143296, %v363_v5  ;;  %v353_v14 = vadd.f32 0.00028619796, %v352_v4  ;;  %v712_v18 = vmul.f32 0.70710677, %v700_v6 }
 0x1a3   :  { %v273_v12 = vadd.f32 0.00028619796, %v272_v7  ;;  %v284_v13 = vadd.f32 0.001143296, %v283_v8  ;;  %v709_v17 = vmul.f32 0.70710677, %v705_v9 }
 0x1a4   :  { %v365_v16 = vmul.f32 %v364_v10, %v693_v1  ;;  %v390_v26 = vmul.f32 %v712_v18, %v712_v18  ;;  %v354_v28 = vmul.f32 %v353_v14, %v693_v1 }
 0x1a5   :  { %v229_v15 = vpop.f32.mrf.mxu2  ;;  %v274_v19 = vmul.f32 %v273_v12, %v695_v3  ;;  %v285_v20 = vmul.f32 %v284_v13, %v695_v3  ;;  %v310_v23 = vmul.f32 %v709_v17, %v709_v17 }
 0x1a6   :  { %v237_v21 = vadd.f32 %v229_v15, %v184_v11  ;;  %v366_v22 = vadd.f32 0.014752088, %v365_v16  ;;  %v724_v32 = vmin.f32 %v390_v26, 16.0  ;;  %v355_v24 = vadd.f32 0.0036580483, %v354_v28 }
 0x1a7   :  { %v286_v27 = vadd.f32 0.014752088, %v285_v20  ;;  %v275_v29 = vadd.f32 0.0036580483, %v274_v19  ;;  %v722_v31 = vmin.f32 %v310_v23, 16.0 }
 0x1a8   :  { %242 = vst [vmem:[#allocation2 + $0x18] sm:$0x3] %v237_v21  ;;  %v367_v30 = vmul.f32 %v366_v22, %v693_v1  ;;  %v392_v44 = vmul.f32 2.1237322e-06, %v724_v32  ;;  %v403_v47 = vmul.f32 3.8918573e-05, %v724_v32  ;;  %v356_v53 = vmul.f32 %v355_v24, %v693_v1 }
 0x1a9   :  { %v287_v33 = vmul.f32 %v286_v27, %v695_v3  ;;  %v312_v35 = vmul.f32 2.1237322e-06, %v722_v31  ;;  %v323_v40 = vmul.f32 3.8918573e-05, %v722_v31  ;;  %v276_v42 = vmul.f32 %v275_v29, %v695_v3 }
 0x1aa   :  { %v368_v34 = vadd.f32 0.112945676, %v367_v30  ;;  %v393_v36 = vadd.f32 0.00028619796, %v392_v44  ;;  %v404_v52 = vadd.f32 0.001143296, %v403_v47 }
 0x1ab   :  { %v288_v39 = vadd.f32 0.112945676, %v287_v33  ;;  %v313_v25 = vadd.f32 0.00028619796, %v312_v35  ;;  %v324_v46 = vadd.f32 0.001143296, %v323_v40 }
 0x1ac   :  { %v369_v43 = vmul.f32 %v368_v34, %v693_v1  ;;  %v277_v37 = vadd.f32 0.05243302, %v276_v42  ;;  %v394_v62 = vmul.f32 %v393_v36, %v724_v32  ;;  %v405_v63 = vmul.f32 %v404_v52, %v724_v32 }
 0x1ad   :  { %v231_v41 = vpop.f32.mrf.mxu2  ;;  %v289_v45 = vmul.f32 %v288_v39, %v695_v3  ;;  %v314_v49 = vmul.f32 %v313_v25, %v722_v31  ;;  %v325_v51 = vmul.f32 %v324_v46, %v722_v31  ;;  %v357_v10 = vadd.f32 0.05243302, %v356_v53 }
 0x1ae   :  { %v370_v48 = vadd.f32 0.4994258, %v369_v43  ;;  %v406_v7 = vadd.f32 0.014752088, %v405_v63  ;;  %v278_v8 = vmul.f32 %v277_v37, %v695_v3  ;;  %v395_v11 = vadd.f32 0.0036580483, %v394_v62 }
 0x1af   :  { %v290_v50 = vadd.f32 0.4994258, %v289_v45  ;;  %v315_v55 = vadd.f32 0.0036580483, %v314_v49  ;;  %v326_v58 = vadd.f32 0.014752088, %v325_v51  ;;  %v358_v19 = vmul.f32 %v357_v10, %v693_v1 }
 0x1b0   :  { %v371_v54 = vmul.f32 %v370_v48, %v693_v1  ;;  %v250_v12 = vld [vmem:[#allocation2 + $0x18] sm:$0x3]  ;;  %v407_v15 = vmul.f32 %v406_v7, %v724_v32  ;;  %v279_v16 = vadd.f32 0.18741608, %v278_v8  ;;  %v396_v22 = vmul.f32 %v395_v11, %v724_v32 }
 0x1b1   :  { %v291_v57 = vmul.f32 %v290_v50, %v695_v3  ;;  %v316_v4 = vmul.f32 %v315_v55, %v722_v31  ;;  %v327_v5 = vmul.f32 %v326_v58, %v722_v31  ;;  %v753_v20 = vadd.f32 %v675_v56, %v250_v12 }
 0x1b2   :  { %v741_v0 = vadd.f32 1.0, %v371_v54  ;;  %v408_v23 = vadd.f32 0.112945676, %v407_v15  ;;  %v280_v56 = vmul.f32 %v279_v16, %v695_v3  ;;  %v359_v35 = vadd.f32 0.18741608, %v358_v19 }
 0x1b3   :  { %v743_v2 = vadd.f32 1.0, %v291_v57  ;;  %v317_v13 = vadd.f32 0.05243302, %v316_v4  ;;  %v328_v14 = vadd.f32 0.112945676, %v327_v5 }
 0x1b4   :  { %553 = vrcp.f32 %v741_v0  ;;  %v760_v27 = vmul.f32 0.70710677, %v753_v20  ;;  %v409_v39 = vmul.f32 %v408_v23, %v724_v32  ;;  %v397_v41 = vadd.f32 0.05243302, %v396_v22 }
 0x1b5   :  { %555 = vrcp.f32 %v743_v2  ;;  %v329_v21 = vmul.f32 %v328_v14, %v722_v31  ;;  %v318_v30 = vmul.f32 %v317_v13, %v722_v31  ;;  %v360_v47 = vmul.f32 %v359_v35, %v693_v1 }
 0x1b6   :  { %v430_v42 = vmul.f32 %v760_v27, %v760_v27  ;;  %v410_v25 = vadd.f32 0.4994258, %v409_v39  ;;  %v281_v36 = vadd.f32 1.1283791, %v280_v56  ;;  %v398_v50 = vmul.f32 %v397_v41, %v724_v32 }
 0x1b7   :  { %v330_v33 = vadd.f32 0.4994258, %v329_v21  ;;  %v319_v44 = vadd.f32 0.18741608, %v318_v30  ;;  %vm298_vm3 = vweird.f32 %v743_v2  ;;  %v304_v52 = vand.u32 2147483648, %v743_v2 }
 0x1b8   :  { %v773_v46 = vmin.f32 %v430_v42, 16.0  ;;  %v411_v49 = vmul.f32 %v410_v25, %v724_v32  ;;  %v302_v53 = vand.u32 2147483647, %v743_v2  ;;  %v384_v62 = vand.u32 2147483648, %v741_v0 }
 0x1b9   :  { %v331_v40 = vmul.f32 %v330_v33, %v722_v31  ;;  %v320_v1 = vmul.f32 %v319_v44, %v722_v31  ;;  %v399_v4 = vadd.f32 0.18741608, %v398_v50  ;;  %v305_v31 = vor.u32 1.1754944e-38, %v304_v52 }
 0x1ba   :  { %v757_v26 = vpop.eup %553  ;;  %v782_v37 = vadd.f32 1.0, %v411_v49  ;;  %v432_v54 = vmul.f32 2.1237322e-06, %v773_v46  ;;  %v443_v55 = vmul.f32 3.8918573e-05, %v773_v46  ;;  %vm378_vm6 = vweird.f32 %v741_v0 }
 0x1bb   :  { %v556_v28 = vpop.eup %555  ;;  %v374_v29 = vmul.f32 %v757_v26, %v741_v0  ;;  %v771_v45 = vadd.f32 1.0, %v331_v40  ;;  %vm379_vm5 = vweird.f32 %v757_v26  ;;  %v382_v5 = vand.u32 2147483647, %v741_v0 }
 0x1bc   :  { %v294_v34 = vmul.f32 %v556_v28, %v743_v2  ;;  %vm299_vm0 = vweird.f32 %v556_v28  ;;  %v361_v2 = vadd.f32 1.1283791, %v360_v47  ;;  %v433_v7 = vadd.f32 0.00028619796, %v432_v54  ;;  %vm801_vm8 = vmor %vm378_vm6, %vm379_vm5 }
 0x1bd   :  { %v375_v24 = vsub.f32 1.0, %v374_v29  ;;  %557 = vrcp.f32 %v771_v45  ;;  %vm788_vm4 = vmor %vm298_vm3, %vm299_vm0  ;;  %v282_v10 = vmul.f32 %v281_v36, %v687_v61  ;;  %vm303_vm7 = vcmp.eq.f32.partialorder %v302_v53, 8.507059e+37 }
 0x1be   :  { %v295_v43 = vsub.f32 1.0, %v294_v34  ;;  %559 = vrcp.f32 %v782_v37  ;;  %v321_v12 = vadd.f32 1.1283791, %v320_v1  ;;  %v444_v13 = vadd.f32 0.001143296, %v443_v55 }
 0x1bf   :  { %v376_v48 = vmul.f32 %v757_v26, %v375_v24  ;;  %v385_v16 = vor.u32 1.1754944e-38, %v384_v62  ;;  %v342_v0 = vand.u32 2147483647, %v771_v45  ;;  %v400_v21 = vmul.f32 %v399_v4, %v724_v32 }
 0x1c0   :  { %v296_v3 = vmul.f32 %v556_v28, %v295_v43  ;;  %v434_v61 = vmul.f32 %v433_v7, %v773_v46  ;;  %v445_v22 = vmul.f32 %v444_v13, %v773_v46  ;;  %v362_v23 = vmul.f32 %v361_v2, %v684_v38 }
 0x1c1   :  { %v377_v58 = vadd.f32 %v757_v26, %v376_v48  ;;  %vm383_vm9 = vcmp.eq.f32.partialorder %v382_v5, 8.507059e+37  ;;  %v344_v29 = vand.u32 2147483648, %v771_v45  ;;  %v322_v56 = vmul.f32 %v321_v12, %v709_v17 }
 0x1c2   :  { %v297_v51 = vadd.f32 %v556_v28, %v296_v3  ;;  %v446_v34 = vadd.f32 0.014752088, %v445_v22  ;;  %v435_v39 = vadd.f32 0.0036580483, %v434_v61  ;;  %vm338_vm11 = vweird.f32 %v771_v45 }
 0x1c3   :  { %v558_v8 = vpop.eup %557  ;;  %v381_v15 = vsel %vm801_vm8, %v757_v26, %v377_v58  ;;  %vm818_vm12 = vcmp.eq.f32.partialorder %v342_v0, 8.507059e+37  ;;  %v401_v38 = vadd.f32 1.1283791, %v400_v21  ;;  %v345_v43 = vor.u32 1.1754944e-38, %v344_v29 }
 0x1c4   :  { %v301_v63 = vsel %vm788_vm4, %v556_v28, %v297_v51  ;;  %v334_v19 = vmul.f32 %v558_v8, %v771_v45  ;;  %v560_v30 = vpop.eup %559  ;;  %v386_v26 = vsel %vm383_vm9, %v385_v16, %v381_v15  ;;  %vm339_vm10 = vweird.f32 %v558_v8 }
 0x1c5   :  { %v306_v14 = vsel %vm303_vm7, %v305_v31, %v301_v63  ;;  %v414_v32 = vmul.f32 %v560_v30, %v782_v37  ;;  %v447_v40 = vmul.f32 %v446_v34, %v773_v46  ;;  %v387_v41 = vmul.f32 %v386_v26, %v362_v23  ;;  %vm340_vm13 = vmor %vm338_vm11, %vm339_vm10 }
 0x1c6   :  { %v335_v28 = vsub.f32 1.0, %v334_v19  ;;  %v307_v33 = vmul.f32 %v306_v14, %v282_v10  ;;  %v422_v44 = vand.u32 2147483647, %v782_v37  ;;  %v424_v3 = vand.u32 2147483648, %v782_v37 }
 0x1c7   :  { %v415_v25 = vsub.f32 1.0, %v414_v32  ;;  %v448_v47 = vadd.f32 0.112945676, %v447_v40  ;;  %vm419_vm14 = vweird.f32 %v560_v30  ;;  %v436_v49 = vmul.f32 %v435_v39, %v773_v46 }
 0x1c8   :  { %v336_v35 = vmul.f32 %v558_v8, %v335_v28  ;;  %v505_v17 = vclamps-f32 %v307_v33, 1.0  ;;  %v402_v52 = vmul.f32 %v401_v38, %v712_v18  ;;  %vm418_vm15 = vweird.f32 %v782_v37 }
 0x1c9   :  { %v416_v45 = vmul.f32 %v560_v30, %v415_v25  ;;  %v449_v50 = vmul.f32 %v448_v47, %v773_v46  ;;  %v507_v1 = vclamps-f32 %v387_v41, 1.0  ;;  %vm420_vm1 = vmor %vm418_vm15, %vm419_vm14  ;;  %vm423_vm2 = vcmp.eq.f32.partialorder %v422_v44, 8.507059e+37 }
 0x1ca   :  { %v337_v42 = vadd.f32 %v558_v8, %v336_v35  ;;  %v425_v54 = vor.u32 1.1754944e-38, %v424_v3  ;;  %v470_v57 = vadd.f32 1.0, %v505_v17  ;;  %v437_v63 = vadd.f32 0.05243302, %v436_v49 }
 0x1cb   :  { %v417_v53 = vadd.f32 %v560_v30, %v416_v45  ;;  %v450_v55 = vadd.f32 0.4994258, %v449_v50  ;;  %v260_v31 = vmul.f32 0.5, %v681_v60  ;;  %v261_v5 = vmul.f32 0.5, %v705_v9 }
 0x1cc   :  { %v341_v48 = vsel %vm340_vm13, %v558_v8, %v337_v42  ;;  %v472_v8 = vadd.f32 1.0, %v507_v1  ;;  %v438_v13 = vmul.f32 %v437_v63, %v773_v46  ;;  %v262_v14 = vmul.f32 0.5, %v678_v59 }
 0x1cd   :  { %v346_v36 = vsel %vm818_vm12, %v345_v43, %v341_v48  ;;  %v421_v62 = vsel %vm420_vm1, %v560_v30, %v417_v53  ;;  %v451_v4 = vmul.f32 %v450_v55, %v773_v46  ;;  %v475_v10 = vmul.f32 %v470_v57, %v260_v31 }
 0x1ce   :  { %v347_v51 = vmul.f32 %v346_v36, %v322_v56  ;;  %v426_v2 = vsel %vm423_vm2, %v425_v54, %v421_v62  ;;  %v263_v16 = vmul.f32 0.5, %v700_v6  ;;  %v477_v0 = vmul.f32 %v472_v8, %v262_v14 }
 0x1cf   :  { %v427_v7 = vmul.f32 %v426_v2, %v402_v52  ;;  %v452_v37 = vadd.f32 1.0, %v451_v4  ;;  %v439_v9 = vadd.f32 0.18741608, %v438_v13 }
 0x1d0   :  { %v506_v58 = vclamps-f32 %v347_v51, 1.0 }
 0x1d1   :  { %v508_v12 = vclamps-f32 %v427_v7, 1.0  ;;  %561 = vrcp.f32 %v452_v37  ;;  %v440_v22 = vmul.f32 %v439_v9, %v773_v46  ;;  %v464_v28 = vand.u32 2147483648, %v452_v37 }
 0x1d2   :  { %v471_v18 = vadd.f32 1.0, %v506_v58  ;;  %v462_v30 = vand.u32 2147483647, %v452_v37  ;;  %vm458_vm3 = vweird.f32 %v452_v37  ;;  %v264_v46 = vmul.f32 0.5, %v753_v20 }
 0x1d3   :  { %v473_v19 = vadd.f32 1.0, %v508_v12  ;;  %v441_v6 = vadd.f32 1.1283791, %v440_v22  ;;  %v465_v26 = vor.u32 1.1754944e-38, %v464_v28 }
 0x1d4   :  { %v476_v11 = vmul.f32 %v471_v18, %v261_v5  ;;  %vm463_vm5 = vcmp.eq.f32.partialorder %v462_v30, 8.507059e+37 }
 0x1d5   :  { %v478_v60 = vmul.f32 %v473_v19, %v263_v16  ;;  %v442_v56 = vmul.f32 %v441_v6, %v760_v27 }
 0x1d6   :  { %v523_v15 = vpack.c.bf16 %v476_v11, %v475_v10 }
 0x1d7   :  { %v528_v21 = vpack.c.bf16 %v478_v60, %v477_v0  ;;  %v562_v61 = vpop.eup %561 }
 0x1d8   :  { %524 = vst [vmem:[%s854_s5] sm:$0xff] %v523_v15   ;;  %v454_v59 = vmul.f32 %v562_v61, %v452_v37  ;;  %vm459_vm0 = vweird.f32 %v562_v61 }
 0x1d9   :  { %531 = vst [vmem:[%s854_s5 + $0x8] sm:$0xff] %v528_v21   ;;  %vm460_vm4 = vmor %vm458_vm3, %vm459_vm0 }
 0x1da   :  { %v455_v23 = vsub.f32 1.0, %v454_v59 }
 0x1dc   :  { %v456_v29 = vmul.f32 %v562_v61, %v455_v23 }
 0x1de   :  { %v457_v33 = vadd.f32 %v562_v61, %v456_v29 }
 0x1e0   :  { %v461_v34 = vsel %vm460_vm4, %v562_v61, %v457_v33 }
 0x1e1   :  { %v466_v35 = vsel %vm463_vm5, %v465_v26, %v461_v34 }
 0x1e2   :  { %v467_v32 = vmul.f32 %v466_v35, %v442_v56 }
 0x1e4   :  { %v509_v39 = vclamps-f32 %v467_v32, 1.0 }
 0x1e6   :  { %v474_v24 = vadd.f32 1.0, %v509_v39 }
 0x1e8   :  { %v479_v38 = vmul.f32 %v474_v24, %v264_v46 }
 0x1ea   :  { %v484_v40 = vpack.c.bf16 %v479_v38, %v479_v38 }
 0x1ec   :  { %489 = vst [vmem:[%s854_s5 + $0x10] sm:$0x1] %v484_v40 }

// kernel: vit_forward.23
= control target key start
LH: loop header
LB: loop body
LE: loop exit
PB: predicated region body
PF: predicated region fallthrough
CT: control target
= control target key end

     0   :  { %vm30_vm0 = vcmask 254976   ;;  %s240_s0 = inlined_call_operand.vmem [shape: bf16[2,32], index: 0, kind: input, shape index: {}]   ;;  %s241_s1 = inlined_call_operand.vmem [shape: bf16[32,10], index: 1, kind: input, shape index: {}]   ;;  %s242_s2 = inlined_call_operand.vmem [shape: f32[1,10], index: 2, kind: input, shape index: {}]   ;;  %s243_s3 = inlined_call_operand.vmem [shape: f32[1,32], index: 3, kind: input, shape index: {}]   ;;  %s244_s4 = inlined_call_operand.vmem [shape: f32[1,32], index: 4, kind: input, shape index: {}]   ;;  %s245_s5 = inlined_call_operand.hbm [shape: f32[2,10], index: 5, kind: output, shape index: {}]  }
   0x1   :  { %v28_v0 = vld [vmem:[%s240_s0] sm:$0x1] }
   0x2   :  { %v29_v1 = vunpack.c.l.bf16 %v28_v0 }
   0x3   :  { %10 = vsyncpa [#allocation4], 0  ;;  %v181_v3 = vmov 32.0   ;;  %v144_v15 = vld [vmem:[%s241_s1 + $0x8] sm:$0xff]  ;;  %v143_v16 = vld [vmem:[%s241_s1] sm:$0xff]  ;;  %vm26_vm2 = vcmask 74752  }
   0x4   :  { %v31_v2 = vsel %vm30_vm0, %v29_v1, 0.0  ;;  %151 = vrcp.f32 %v181_v3  ;;  %98 = vmatpush.bf16.msra.mxu0 %v144_v15  ;;  %v182_v18 = vmov 0.0   ;;  %v148_v27 = vld [vmem:[%s243_s3] ss:$0 sm:$0xff]  ;;  %vm88_vm6 = vcmask 261120   ;;  %s183_s3 = smov [#allocation3]  }
   0x5   :  { %32 = vadd.xlane.f32.xlu0 %v31_v2  ;;  %27 = vst.msk [vmem:[#allocation2] sm:$0x3] %vm26_vm2, %v182_v18  ;;  %v149_v30 = vld [vmem:[%s244_s4] ss:$0 sm:$0xff]  ;;  %s123_s28 = sshll.u32 %s183_s3, 4  ;;  %s125_s4 = sshll.u32 %s245_s5, 4  ;;  %s124_s28 = int_to_ptr.vmem [resolvable:$true] %s123_s28  ;;  %s126_s4 = int_to_ptr.hbm [resolvable:$true] %s125_s4 }
   0x6   :  { %v150_v37 = vld [vmem:[%s242_s2] ss:$0 sm:$0xff] }
   0x8   :  { %99 = vmatpush.bf16.msra.mxu0 %v143_v16 }
   0xa   :  { %v152_v4 = vpop.eup %151 }
   0xb   :  { %v35_v5 = vmul.f32 32.0, %v152_v4  ;;  %vm39_vm1 = vweird.f32 %v152_v4 }
   0xc   :  { %v71_v34 = vld [vmem:[#allocation2] sm:$0x3] }
   0xd   :  { %v36_v6 = vsub.f32 1.0, %v35_v5 }
   0xf   :  { %v37_v7 = vmul.f32 %v152_v4, %v36_v6 }
  0x11   :  { %v38_v8 = vadd.f32 %v152_v4, %v37_v7 }
  0x13   :  { %v40_v9 = vsel %vm39_vm1, %v152_v4, %v38_v8 }
  0x78   :  { %v33_v10 = vpop.xlane.xlu0 %32 }
  0x79   :  { %v41_v11 = vmul.f32 %v40_v9, %v33_v10 }
  0x7b   :  { %v42_v12 = vsub.f32 %v29_v1, %v41_v11 }
  0x7d   :  { %v43_v13 = vmul.f32 %v42_v12, %v42_v12 }
  0x7f   :  { %v44_v14 = vsel %vm30_vm0, %v43_v13, 0.0 }
  0x80   :  { %45 = vadd.xlane.f32.xlu0 %v44_v14 }
  0xf3   :  { %v46_v17 = vpop.xlane.xlu0 %45 }
  0xf4   :  { %v47_v19 = vmul.f32 %v46_v17, %v40_v9 }
  0xf6   :  { %v48_v20 = vadd.f32 1e-05, %v47_v19 }
  0xf8   :  { %153 = vrsqrt.f32 %v48_v20  ;;  %vm55_vm4 = vweird.f32 %v48_v20 }
  0xfe   :  { %v154_v21 = vpop.eup %153 }
  0xff   :  { %v50_v22 = vmul.f32 %v154_v21, %v48_v20  ;;  %vm56_vm3 = vweird.f32 %v154_v21 }
 0x100   :  { %vm57_vm5 = vmor %vm55_vm4, %vm56_vm3 }
 0x101   :  { %v51_v23 = vmul.f32 %v154_v21, %v50_v22 }
 0x103   :  { %v52_v24 = vmul.f32 0.5, %v51_v23 }
 0x105   :  { %v53_v25 = vsub.f32 1.5, %v52_v24 }
 0x107   :  { %v54_v26 = vmul.f32 %v154_v21, %v53_v25 }
 0x109   :  { %v58_v28 = vsel %vm57_vm5, %v154_v21, %v54_v26 }
 0x10a   :  { %v59_v29 = vmul.f32 %v58_v28, %v42_v12 }
 0x10c   :  { %v64_v31 = vmul.f32 %v148_v27, %v59_v29 }
 0x10e   :  { %v69_v32 = vadd.f32 %v149_v30, %v64_v31 }
 0x110   :  { %v70_v33 = vpack.c.bf16 %v69_v32, %v69_v32 }
 0x112   :  { %142 = vmatmul.msk.bf16.vlgmr.msra.gmra.mxu0 %vm88_vm6, %v70_v33 }
 0x18f   :  { %v101_v35 = vpop.f32.mrf.mxu0 }
 0x190   :  { %v105_v36 = vadd.f32 %v101_v35, %v71_v34 }
 0x192   :  { %107 = vst.msk [vmem:[#allocation2] sm:$0x3] %vm26_vm2, %v105_v36 }
 0x197   :  { %v103_v38 = vpop.f32.mrf.mxu0 }
 0x199   :  { %v111_v39 = vld [vmem:[#allocation2] sm:$0x3] }
 0x19a   :  { %v116_v40 = vadd.f32 %v150_v37, %v111_v39 }
 0x19c   :  { %117 = vst.msk [vmem:[#allocation3] sm:$0x3] %vm26_vm2, %v116_v40 }
 0x19d   :  { %128 = dma.vmem_to_hbm [thread:$0]  %s124_s28, 32, %s126_s4, [#allocation4]  }
 0x19e   :  { %179 = dma.done.wait [#allocation4], 32  }
 0x19f   :  { %180 = vsyncadd [#allocation4], 4294967264 }
 0x1a0   :  { %133 = vsyncpa [#allocation4], 1 }

</bundles_post_ra>
